<compile_context>
chip_gen: v7x
topology: tpu7x:2x2x1
jax: 0.10.0
libtpu: 0.0.40
codegen_flags: <defaults>
</compile_context>

<pallas_src>
import functools

import jax
import jax.numpy as jnp
from jax import lax
from jax.experimental import pallas as pl
from jax.experimental.pallas import tpu as pltpu


def _drgc_kernel(x_ref, ram_ref, a_hcat_ref, wall_ref, ball_ref, out_ref, y_ref,
                 *, V, K, Cout, TB, unroll):
    """One grid step = one (n, t-block) pair covering TB frames and both persons."""
    kc = K * Cout
    two_v = 2 * V

    # --- fused 1x1 convs: K spatial kernels + conv_RAM, both persons, TB frames ---
    # (TB*2V, Cin) @ (Cin, (K+1)*Cout) -> f32, staged in VMEM scratch.
    xf = x_ref[0, 0]                                             # (TB*2V, Cin) bf16
    y_ref[...] = (jnp.dot(xf, wall_ref[...],
                          preferred_element_type=jnp.float32) + ball_ref[...])

    a_hc = a_hcat_ref[...]                                       # (V, K*V) f32

    def frame_body(t, carry):
        base = t * two_v
        row = t * V
        if two_v % 8 == 0:
            base = pl.multiple_of(base, 8)
        if V % 8 == 0:
            row = pl.multiple_of(row, 8)

        yf = y_ref[pl.ds(base, two_v), :]                        # (2V, (K+1)*Cout)
        ya = yf[:V]                                              # person a
        yb = yf[V:]                                              # person b

        # Spatial branch: sum_k A_k^T @ conv_k(x_p) == A_hcat @ stacked,
        # with both persons batched into the output columns:
        #   (V, K*V) @ (K*V, 2*Cout) -> (V, 2*Cout)
        st = jnp.concatenate(
            [jnp.concatenate([ya[:, k * Cout:(k + 1) * Cout],
                              yb[:, k * Cout:(k + 1) * Cout]], axis=1)
             for k in range(K)], axis=0)                         # (K*V, 2*Cout)
        out_s = jnp.dot(a_hc, st, preferred_element_type=jnp.float32)

        # Dyadic relational branch (frame-dependent RAM):
        ram_t = ram_ref[0, t].astype(jnp.float32)                # (V, V)
        yra = ya[:, kc:]                                         # conv_RAM(person a)
        yrb = yb[:, kc:]                                         # conv_RAM(person b)
        a_dr = jnp.dot(ram_t, yrb, preferred_element_type=jnp.float32)      # RAM   @ xb_r
        b_dr = lax.dot_general(ram_t, yra, (((0,), (0,)), ((), ())),
                               preferred_element_type=jnp.float32)          # RAM^T @ xa_r

        frame = out_s + jnp.concatenate([a_dr, b_dr], axis=1)    # (V, 2*Cout)
        out_ref[0, 0, pl.ds(row, V), :] = frame.astype(out_ref.dtype)
        return carry

    lax.fori_loop(0, TB, frame_body, 0, unroll=unroll)


@functools.partial(jax.jit, static_argnames=("kernel_size", "block_t", "io_dtype"))
def spatial_dyadic_relational_gc(x, RAM, A, Wconv, bconv, Wram, bram, *,
                                 kernel_size, block_t=32, io_dtype=jnp.bfloat16):
    """Pallas implementation of SpatialDyadicRelationalGC.forward.

    x:     (N, 2, C_in, T, V)
    RAM:   (N, T, V, V)
    A:     (K, V, V)
    Wconv: (K*C_out, C_in), bconv: (K*C_out,)   -- nn.Conv2d(C_in, C_out*K, 1)
    Wram:  (C_out, C_in),   bram:  (C_out,)     -- nn.Conv2d(C_in, C_out, 1)
    returns (out (N, 2, C_out, T, V) float32, RAM, A)
    """
    K = kernel_size
    N, M, Cin, T, V = x.shape
    assert M == 2
    Cout = Wram.shape[0]
    cols = (K + 1) * Cout

    TB = int(min(block_t, T))
    n_tb = -(-T // TB)            # cdiv
    T_pad = n_tb * TB

    # One channels-last copy with both persons folded into the row dimension:
    #   (N, 2, Cin, T, V) -> (N, T, 2, V, Cin) -> (N, n_tb, TB*2*V, Cin)   [bf16]
    # TODO(synk): fold this transpose into the kernel (in-kernel XLU transpose of a
    # (Cin, TB, V) block) to drop one extra HBM round-trip of the activations.
    xg = jnp.transpose(x, (0, 3, 1, 4, 2)).astype(io_dtype)
    ramg = RAM.astype(io_dtype)
    if T_pad != T:
        xg = jnp.pad(xg, ((0, 0), (0, T_pad - T), (0, 0), (0, 0), (0, 0)))
        ramg = jnp.pad(ramg, ((0, 0), (0, T_pad - T), (0, 0), (0, 0)))
    xg = xg.reshape(N, n_tb, TB * 2 * V, Cin)

    # Fused conv weights: columns [0:K*Cout] are the spatial conv (torch channel
    # ordering k*Cout + c), columns [K*Cout:] are conv_RAM.
    wall = jnp.concatenate([Wconv.T, Wram.T], axis=1).astype(io_dtype)   # (Cin, cols)
    ball = jnp.concatenate([bconv, bram]).astype(jnp.float32)[None, :]   # (1, cols)
    # a_hcat[v, k*V + w] = A[k, w, v]   (== hconcat of all A_k^T)
    a_hcat = jnp.transpose(A, (2, 0, 1)).reshape(V, K * V).astype(jnp.float32)

    itemsize = jnp.dtype(io_dtype).itemsize
    blk_bytes = (TB * 2 * V * Cin * itemsize            # x block
                 + TB * V * V * itemsize                # RAM block
                 + TB * V * 2 * Cout * 4                # output block (f32)
                 + Cin * cols * itemsize + cols * 4 + V * K * V * 4)   # weights
    vmem_limit = int(min(max(2 * blk_bytes + TB * 2 * V * cols * 4 + (4 << 20),
                             32 << 20), 64 << 20))

    kernel = functools.partial(
        _drgc_kernel, V=V, K=K, Cout=Cout, TB=TB,
        unroll=(True if TB <= 8 else 4))

    out = pl.pallas_call(
        kernel,
        out_shape=jax.ShapeDtypeStruct((N, n_tb, TB * V, 2 * Cout), jnp.float32),
        grid_spec=pltpu.PrefetchScalarGridSpec(
            num_scalar_prefetch=0,
            grid=(N, n_tb),
            in_specs=[
                pl.BlockSpec((1, 1, TB * 2 * V, Cin), lambda n, t: (n, t, 0, 0)),  # x
                pl.BlockSpec((1, TB, V, V), lambda n, t: (n, t, 0, 0)),            # RAM
                pl.BlockSpec((V, K * V), lambda n, t: (0, 0)),                     # A_hcat
                pl.BlockSpec((Cin, cols), lambda n, t: (0, 0)),                    # W fused
                pl.BlockSpec((1, cols), lambda n, t: (0, 0)),                      # bias
            ],
            out_specs=pl.BlockSpec((1, 1, TB * V, 2 * Cout),
                                   lambda n, t: (n, t, 0, 0)),
            scratch_shapes=[pltpu.VMEM((TB * 2 * V, cols), jnp.float32)],
        ),
        compiler_params=pltpu.CompilerParams(
            dimension_semantics=("parallel", "parallel"),
            vmem_limit_bytes=vmem_limit),
    )(xg, ramg, a_hcat, wall, ball)

    # (N, n_tb, TB*V, 2*Cout) -> (N, T, V, 2, Cout) -> (N, 2, Cout, T, V)
    out = out.reshape(N, T_pad, V, 2, Cout)[:, :T]
    out = jnp.transpose(out, (0, 3, 4, 1, 2))
    return out, RAM, A


def reference_forward(x, RAM, A, Wconv, bconv, Wram, bram, kernel_size):
    """Pure-JAX mirror of the PyTorch forward (NCHW einsums), for checking."""
    K = kernel_size
    xa = x[:, 0]  # (N, C, T, V)
    xb = x[:, 1]

    def conv1x1(xx, W, b):
        return jnp.einsum('oc,nctv->notv', W, xx) + b[None, :, None, None]

    xa_s = conv1x1(xa, Wconv, bconv)
    xb_s = conv1x1(xb, Wconv, bconv)
    N, KC, T, V = xa_s.shape
    Cout = KC // K
    xa_s = xa_s.reshape(N, K, Cout, T, V)
    xb_s = xb_s.reshape(N, K, Cout, T, V)
    xa_s = jnp.einsum('nkctv,kvw->nctw', xa_s, A)
    xb_s = jnp.einsum('nkctv,kvw->nctw', xb_s, A)

    xa_r = conv1x1(xa, Wram, bram)
    xb_r = conv1x1(xb, Wram, bram)
    xa_dr = jnp.einsum('nctw,ntvw->nctv', xb_r, RAM)
    xb_dr = jnp.einsum('nctv,ntvw->nctw', xa_r, RAM)

    out_a = xa_s + xa_dr
    out_b = xb_s + xb_dr
    return jnp.stack((out_a, out_b), axis=1), RAM, A


if __name__ == "__main__":
    # Small, deterministic example shapes.
    N, M, Cin, T, V = 2, 2, 4, 8, 16
    Cout, K = 8, 3

    key = jax.random.PRNGKey(0)
    kx, kram, ka, kw1, kb1, kw2, kb2 = jax.random.split(key, 7)

    x = jax.random.normal(kx, (N, M, Cin, T, V), dtype=jnp.float32)
    RAM = jax.random.normal(kram, (N, T, V, V), dtype=jnp.float32)
    A = jax.random.normal(ka, (K, V, V), dtype=jnp.float32)

    # Deterministic synthetic Conv2d(1x1) parameters (shapes match the module).
    Wconv = 0.1 * jax.random.normal(kw1, (K * Cout, Cin), dtype=jnp.float32)
    bconv = 0.1 * jax.random.normal(kb1, (K * Cout,), dtype=jnp.float32)
    Wram = 0.1 * jax.random.normal(kw2, (Cout, Cin), dtype=jnp.float32)
    bram = 0.1 * jax.random.normal(kb2, (Cout,), dtype=jnp.float32)

    out, ram_out, a_out = spatial_dyadic_relational_gc(
        x, RAM, A, Wconv, bconv, Wram, bram, kernel_size=K)
    out = jax.block_until_ready(out)

    # Correctness check against a pure-JAX mirror, using the same bf16 rounding on
    # the tensors the kernel moves through HBM in bf16 (accumulation stays f32).
    rnd = lambda a: a.astype(jnp.bfloat16).astype(jnp.float32)
    ref_out, ref_ram, ref_a = reference_forward(
        rnd(x), rnd(RAM), A, rnd(Wconv), bconv, rnd(Wram), bram, K)

    assert out.shape == (N, 2, Cout, T, V), out.shape
    assert jnp.allclose(out, ref_out, rtol=5e-2, atol=1e-1), \
        float(jnp.max(jnp.abs(out - ref_out)))
    assert jnp.allclose(ram_out, RAM) and jnp.allclose(a_out, A)

    print("KERNEL_OK")
</pallas_src>

<mosaic_0001>
module attributes {stable_mosaic.version = 11 : i64} {
  func.func @_drgc_kernel(%arg0: i32, %arg1: i32, %arg2: memref<1x1x256x4xbf16, #tpu.memory_space<vmem>>, %arg3: memref<1x8x16x16xbf16, #tpu.memory_space<vmem>>, %arg4: memref<16x48xf32, #tpu.memory_space<vmem>>, %arg5: memref<4x32xbf16, #tpu.memory_space<vmem>>, %arg6: memref<1x32xf32, #tpu.memory_space<vmem>>, %arg7: memref<1x1x128x16xf32, #tpu.memory_space<vmem>>, %arg8: memref<256x32xf32, #tpu.memory_space<vmem>>) attributes {dimension_semantics = [#tpu.dimension_semantics<parallel>, #tpu.dimension_semantics<parallel>], iteration_bounds = array<i64: 2, 1>, scalar_prefetch = 0 : i64, scratch_operands = 1 : i64, tpu.core_type = #tpu.core_type<tc>, window_params = [{transform_indices = @transform_0, window_bounds = array<i64: 1, 1, 256, 4>}, {transform_indices = @transform_1, window_bounds = array<i64: 1, 8, 16, 16>}, {pipeline_mode = #tpu.pipeline_mode<synchronous>, transform_indices = @transform_2, window_bounds = array<i64: 16, 48>}, {pipeline_mode = #tpu.pipeline_mode<synchronous>, transform_indices = @transform_3, window_bounds = array<i64: 4, 32>}, {pipeline_mode = #tpu.pipeline_mode<synchronous>, transform_indices = @transform_4, window_bounds = array<i64: 1, 32>}, {transform_indices = @transform_5, window_bounds = array<i64: 1, 1, 128, 16>}]} {
    %c0 = arith.constant 0 : index
    %c0_0 = arith.constant 0 : index
    %c0_1 = arith.constant 0 : index
    %c0_2 = arith.constant 0 : index
    %0 = vector.load %arg2[%c0, %c0_0, %c0_1, %c0_2] : memref<1x1x256x4xbf16, #tpu.memory_space<vmem>>, vector<1x1x256x4xbf16>
    %1 = vector.shape_cast %0 : vector<1x1x256x4xbf16> to vector<256x4xbf16>
    %c0_3 = arith.constant 0 : index
    %c0_4 = arith.constant 0 : index
    %2 = vector.load %arg5[%c0_3, %c0_4] : memref<4x32xbf16, #tpu.memory_space<vmem>>, vector<4x32xbf16>
    %cst = arith.constant dense<0.000000e+00> : vector<256x32xf32>
    %3 = tpu.matmul %1, %2, %cst {dimension_numbers = #tpu.dot_dimension_numbers<[1], [0], [0], [1], [0, 0, 1, 1], [], []>} : vector<256x4xbf16>, vector<4x32xbf16>, vector<256x32xf32> -> vector<256x32xf32>
    %c0_5 = arith.constant 0 : index
    %c0_6 = arith.constant 0 : index
    %4 = vector.load %arg6[%c0_5, %c0_6] : memref<1x32xf32, #tpu.memory_space<vmem>>, vector<1x32xf32>
    %5 = vector.broadcast %4 : vector<1x32xf32> to vector<256x32xf32>
    %6 = arith.addf %3, %5 : vector<256x32xf32>
    %c0_7 = arith.constant 0 : index
    %c0_8 = arith.constant 0 : index
    %7 = vector.load %arg8[%c0_7, %c0_8] : memref<256x32xf32, #tpu.memory_space<vmem>>, vector<256x32xf32>
    tpu.vector_store %arg8[%c0_7, %c0_8], %6 {strides = array<i32>} : memref<256x32xf32, #tpu.memory_space<vmem>>, vector<256x32xf32>,
    %c0_9 = arith.constant 0 : index
    %c0_10 = arith.constant 0 : index
    %8 = vector.load %arg4[%c0_9, %c0_10] : memref<16x48xf32, #tpu.memory_space<vmem>>, vector<16x48xf32>
    %c0_i32 = arith.constant 0 : i32
    %c32_i32 = arith.constant 32 : i32
    %9 = arith.muli %c0_i32, %c32_i32 : i32
    %c16_i32 = arith.constant 16 : i32
    %10 = arith.muli %c0_i32, %c16_i32 : i32
    %11 = tpu.assume_multiple %9, 8 : i32
    %12 = tpu.assume_multiple %10, 8 : i32
    %13 = arith.index_cast %11 : i32 to index
    %c0_11 = arith.constant 0 : index
    %14 = vector.load %arg8[%13, %c0_11] : memref<256x32xf32, #tpu.memory_space<vmem>>, vector<32x32xf32>
    %15 = vector.extract_strided_slice %14 {offsets = [0, 0], sizes = [16, 32], strides = [1, 1]} : vector<32x32xf32> to vector<16x32xf32>
    %16 = vector.extract_strided_slice %14 {offsets = [16, 0], sizes = [16, 32], strides = [1, 1]} : vector<32x32xf32> to vector<16x32xf32>
    %17 = vector.extract_strided_slice %15 {offsets = [0, 0], sizes = [16, 8], strides = [1, 1]} : vector<16x32xf32> to vector<16x8xf32>
    %18 = vector.extract_strided_slice %16 {offsets = [0, 0], sizes = [16, 8], strides = [1, 1]} : vector<16x32xf32> to vector<16x8xf32>
    %19 = tpu.concatenate %17, %18 in 1 : vector<16x8xf32>, vector<16x8xf32> -> vector<16x16xf32>
    %20 = vector.extract_strided_slice %15 {offsets = [0, 8], sizes = [16, 8], strides = [1, 1]} : vector<16x32xf32> to vector<16x8xf32>
    %21 = vector.extract_strided_slice %16 {offsets = [0, 8], sizes = [16, 8], strides = [1, 1]} : vector<16x32xf32> to vector<16x8xf32>
    %22 = tpu.concatenate %20, %21 in 1 : vector<16x8xf32>, vector<16x8xf32> -> vector<16x16xf32>
    %23 = vector.extract_strided_slice %15 {offsets = [0, 16], sizes = [16, 8], strides = [1, 1]} : vector<16x32xf32> to vector<16x8xf32>
    %24 = vector.extract_strided_slice %16 {offsets = [0, 16], sizes = [16, 8], strides = [1, 1]} : vector<16x32xf32> to vector<16x8xf32>
    %25 = tpu.concatenate %23, %24 in 1 : vector<16x8xf32>, vector<16x8xf32> -> vector<16x16xf32>
    %26 = tpu.concatenate %19, %22, %25 in 0 : vector<16x16xf32>, vector<16x16xf32>, vector<16x16xf32> -> vector<48x16xf32>
    %cst_12 = arith.constant dense<0.000000e+00> : vector<16x16xf32>
    %27 = tpu.matmul %8, %26, %cst_12 {dimension_numbers = #tpu.dot_dimension_numbers<[1], [0], [0], [1], [0, 0, 1, 1], [], []>} : vector<16x48xf32>, vector<48x16xf32>, vector<16x16xf32> -> vector<16x16xf32>
    %c0_13 = arith.constant 0 : index
    %28 = arith.index_cast %c0_i32 : i32 to index
    %c0_14 = arith.constant 0 : index
    %c0_15 = arith.constant 0 : index
    %29 = vector.load %arg3[%c0_13, %28, %c0_14, %c0_15] : memref<1x8x16x16xbf16, #tpu.memory_space<vmem>>, vector<1x1x16x16xbf16>
    %30 = vector.shape_cast %29 : vector<1x1x16x16xbf16> to vector<16x16xbf16>
    %31 = arith.extf %30 : vector<16x16xbf16> to vector<16x16xf32>
    %32 = vector.extract_strided_slice %15 {offsets = [0, 24], sizes = [16, 8], strides = [1, 1]} : vector<16x32xf32> to vector<16x8xf32>
    %33 = vector.extract_strided_slice %16 {offsets = [0, 24], sizes = [16, 8], strides = [1, 1]} : vector<16x32xf32> to vector<16x8xf32>
    %cst_16 = arith.constant dense<0.000000e+00> : vector<16x8xf32>
    %34 = tpu.matmul %31, %33, %cst_16 {dimension_numbers = #tpu.dot_dimension_numbers<[1], [0], [0], [1], [0, 0, 1, 1], [], []>} : vector<16x16xf32>, vector<16x8xf32>, vector<16x8xf32> -> vector<16x8xf32>
    %cst_17 = arith.constant dense<0.000000e+00> : vector<16x8xf32>
    %35 = tpu.matmul %31, %32, %cst_17 {dimension_numbers = #tpu.dot_dimension_numbers<[0], [0], [1], [1], [0, 1, 1, 1], [], []>} : vector<16x16xf32>, vector<16x8xf32>, vector<16x8xf32> -> vector<16x8xf32>
    %36 = tpu.concatenate %34, %35 in 1 : vector<16x8xf32>, vector<16x8xf32> -> vector<16x16xf32>
    %37 = arith.addf %27, %36 : vector<16x16xf32>
    %c0_18 = arith.constant 0 : index
    %c0_19 = arith.constant 0 : index
    %38 = arith.index_cast %12 : i32 to index
    %c0_20 = arith.constant 0 : index
    %39 = vector.load %arg7[%c0_18, %c0_19, %38, %c0_20] : memref<1x1x128x16xf32, #tpu.memory_space<vmem>>, vector<1x1x16x16xf32>
    %40 = vector.shape_cast %39 : vector<1x1x16x16xf32> to vector<16x16xf32>
    %41 = vector.shape_cast %37 : vector<16x16xf32> to vector<1x1x16x16xf32>
    tpu.vector_store %arg7[%c0_18, %c0_19, %38, %c0_20], %41 {strides = array<i32>} : memref<1x1x128x16xf32, #tpu.memory_space<vmem>>, vector<1x1x16x16xf32>,
    %c1_i32 = arith.constant 1 : i32
    %c32_i32_21 = arith.constant 32 : i32
    %42 = arith.muli %c1_i32, %c32_i32_21 : i32
    %c16_i32_22 = arith.constant 16 : i32
    %43 = arith.muli %c1_i32, %c16_i32_22 : i32
    %44 = tpu.assume_multiple %42, 8 : i32
    %45 = tpu.assume_multiple %43, 8 : i32
    %46 = arith.index_cast %44 : i32 to index
    %c0_23 = arith.constant 0 : index
    %47 = vector.load %arg8[%46, %c0_23] : memref<256x32xf32, #tpu.memory_space<vmem>>, vector<32x32xf32>
    %48 = vector.extract_strided_slice %47 {offsets = [0, 0], sizes = [16, 32], strides = [1, 1]} : vector<32x32xf32> to vector<16x32xf32>
    %49 = vector.extract_strided_slice %47 {offsets = [16, 0], sizes = [16, 32], strides = [1, 1]} : vector<32x32xf32> to vector<16x32xf32>
    %50 = vector.extract_strided_slice %48 {offsets = [0, 0], sizes = [16, 8], strides = [1, 1]} : vector<16x32xf32> to vector<16x8xf32>
    %51 = vector.extract_strided_slice %49 {offsets = [0, 0], sizes = [16, 8], strides = [1, 1]} : vector<16x32xf32> to vector<16x8xf32>
    %52 = tpu.concatenate %50, %51 in 1 : vector<16x8xf32>, vector<16x8xf32> -> vector<16x16xf32>
    %53 = vector.extract_strided_slice %48 {offsets = [0, 8], sizes = [16, 8], strides = [1, 1]} : vector<16x32xf32> to vector<16x8xf32>
    %54 = vector.extract_strided_slice %49 {offsets = [0, 8], sizes = [16, 8], strides = [1, 1]} : vector<16x32xf32> to vector<16x8xf32>
    %55 = tpu.concatenate %53, %54 in 1 : vector<16x8xf32>, vector<16x8xf32> -> vector<16x16xf32>
    %56 = vector.extract_strided_slice %48 {offsets = [0, 16], sizes = [16, 8], strides = [1, 1]} : vector<16x32xf32> to vector<16x8xf32>
    %57 = vector.extract_strided_slice %49 {offsets = [0, 16], sizes = [16, 8], strides = [1, 1]} : vector<16x32xf32> to vector<16x8xf32>
    %58 = tpu.concatenate %56, %57 in 1 : vector<16x8xf32>, vector<16x8xf32> -> vector<16x16xf32>
    %59 = tpu.concatenate %52, %55, %58 in 0 : vector<16x16xf32>, vector<16x16xf32>, vector<16x16xf32> -> vector<48x16xf32>
    %cst_24 = arith.constant dense<0.000000e+00> : vector<16x16xf32>
    %60 = tpu.matmul %8, %59, %cst_24 {dimension_numbers = #tpu.dot_dimension_numbers<[1], [0], [0], [1], [0, 0, 1, 1], [], []>} : vector<16x48xf32>, vector<48x16xf32>, vector<16x16xf32> -> vector<16x16xf32>
    %c0_25 = arith.constant 0 : index
    %61 = arith.index_cast %c1_i32 : i32 to index
    %c0_26 = arith.constant 0 : index
    %c0_27 = arith.constant 0 : index
    %62 = vector.load %arg3[%c0_25, %61, %c0_26, %c0_27] : memref<1x8x16x16xbf16, #tpu.memory_space<vmem>>, vector<1x1x16x16xbf16>
    %63 = vector.shape_cast %62 : vector<1x1x16x16xbf16> to vector<16x16xbf16>
    %64 = arith.extf %63 : vector<16x16xbf16> to vector<16x16xf32>
    %65 = vector.extract_strided_slice %48 {offsets = [0, 24], sizes = [16, 8], strides = [1, 1]} : vector<16x32xf32> to vector<16x8xf32>
    %66 = vector.extract_strided_slice %49 {offsets = [0, 24], sizes = [16, 8], strides = [1, 1]} : vector<16x32xf32> to vector<16x8xf32>
    %cst_28 = arith.constant dense<0.000000e+00> : vector<16x8xf32>
    %67 = tpu.matmul %64, %66, %cst_28 {dimension_numbers = #tpu.dot_dimension_numbers<[1], [0], [0], [1], [0, 0, 1, 1], [], []>} : vector<16x16xf32>, vector<16x8xf32>, vector<16x8xf32> -> vector<16x8xf32>
    %cst_29 = arith.constant dense<0.000000e+00> : vector<16x8xf32>
    %68 = tpu.matmul %64, %65, %cst_29 {dimension_numbers = #tpu.dot_dimension_numbers<[0], [0], [1], [1], [0, 1, 1, 1], [], []>} : vector<16x16xf32>, vector<16x8xf32>, vector<16x8xf32> -> vector<16x8xf32>
    %69 = tpu.concatenate %67, %68 in 1 : vector<16x8xf32>, vector<16x8xf32> -> vector<16x16xf32>
    %70 = arith.addf %60, %69 : vector<16x16xf32>
    %c0_30 = arith.constant 0 : index
    %c0_31 = arith.constant 0 : index
    %71 = arith.index_cast %45 : i32 to index
    %c0_32 = arith.constant 0 : index
    %72 = vector.load %arg7[%c0_30, %c0_31, %71, %c0_32] : memref<1x1x128x16xf32, #tpu.memory_space<vmem>>, vector<1x1x16x16xf32>
    %73 = vector.shape_cast %72 : vector<1x1x16x16xf32> to vector<16x16xf32>
    %74 = vector.shape_cast %70 : vector<16x16xf32> to vector<1x1x16x16xf32>
    tpu.vector_store %arg7[%c0_30, %c0_31, %71, %c0_32], %74 {strides = array<i32>} : memref<1x1x128x16xf32, #tpu.memory_space<vmem>>, vector<1x1x16x16xf32>,
    %c2_i32 = arith.constant 2 : i32
    %c32_i32_33 = arith.constant 32 : i32
    %75 = arith.muli %c2_i32, %c32_i32_33 : i32
    %c16_i32_34 = arith.constant 16 : i32
    %76 = arith.muli %c2_i32, %c16_i32_34 : i32
    %77 = tpu.assume_multiple %75, 8 : i32
    %78 = tpu.assume_multiple %76, 8 : i32
    %79 = arith.index_cast %77 : i32 to index
    %c0_35 = arith.constant 0 : index
    %80 = vector.load %arg8[%79, %c0_35] : memref<256x32xf32, #tpu.memory_space<vmem>>, vector<32x32xf32>
    %81 = vector.extract_strided_slice %80 {offsets = [0, 0], sizes = [16, 32], strides = [1, 1]} : vector<32x32xf32> to vector<16x32xf32>
    %82 = vector.extract_strided_slice %80 {offsets = [16, 0], sizes = [16, 32], strides = [1, 1]} : vector<32x32xf32> to vector<16x32xf32>
    %83 = vector.extract_strided_slice %81 {offsets = [0, 0], sizes = [16, 8], strides = [1, 1]} : vector<16x32xf32> to vector<16x8xf32>
    %84 = vector.extract_strided_slice %82 {offsets = [0, 0], sizes = [16, 8], strides = [1, 1]} : vector<16x32xf32> to vector<16x8xf32>
    %85 = tpu.concatenate %83, %84 in 1 : vector<16x8xf32>, vector<16x8xf32> -> vector<16x16xf32>
    %86 = vector.extract_strided_slice %81 {offsets = [0, 8], sizes = [16, 8], strides = [1, 1]} : vector<16x32xf32> to vector<16x8xf32>
    %87 = vector.extract_strided_slice %82 {offsets = [0, 8], sizes = [16, 8], strides = [1, 1]} : vector<16x32xf32> to vector<16x8xf32>
    %88 = tpu.concatenate %86, %87 in 1 : vector<16x8xf32>, vector<16x8xf32> -> vector<16x16xf32>
    %89 = vector.extract_strided_slice %81 {offsets = [0, 16], sizes = [16, 8], strides = [1, 1]} : vector<16x32xf32> to vector<16x8xf32>
    %90 = vector.extract_strided_slice %82 {offsets = [0, 16], sizes = [16, 8], strides = [1, 1]} : vector<16x32xf32> to vector<16x8xf32>
    %91 = tpu.concatenate %89, %90 in 1 : vector<16x8xf32>, vector<16x8xf32> -> vector<16x16xf32>
    %92 = tpu.concatenate %85, %88, %91 in 0 : vector<16x16xf32>, vector<16x16xf32>, vector<16x16xf32> -> vector<48x16xf32>
    %cst_36 = arith.constant dense<0.000000e+00> : vector<16x16xf32>
    %93 = tpu.matmul %8, %92, %cst_36 {dimension_numbers = #tpu.dot_dimension_numbers<[1], [0], [0], [1], [0, 0, 1, 1], [], []>} : vector<16x48xf32>, vector<48x16xf32>, vector<16x16xf32> -> vector<16x16xf32>
    %c0_37 = arith.constant 0 : index
    %94 = arith.index_cast %c2_i32 : i32 to index
    %c0_38 = arith.constant 0 : index
    %c0_39 = arith.constant 0 : index
    %95 = vector.load %arg3[%c0_37, %94, %c0_38, %c0_39] : memref<1x8x16x16xbf16, #tpu.memory_space<vmem>>, vector<1x1x16x16xbf16>
    %96 = vector.shape_cast %95 : vector<1x1x16x16xbf16> to vector<16x16xbf16>
    %97 = arith.extf %96 : vector<16x16xbf16> to vector<16x16xf32>
    %98 = vector.extract_strided_slice %81 {offsets = [0, 24], sizes = [16, 8], strides = [1, 1]} : vector<16x32xf32> to vector<16x8xf32>
    %99 = vector.extract_strided_slice %82 {offsets = [0, 24], sizes = [16, 8], strides = [1, 1]} : vector<16x32xf32> to vector<16x8xf32>
    %cst_40 = arith.constant dense<0.000000e+00> : vector<16x8xf32>
    %100 = tpu.matmul %97, %99, %cst_40 {dimension_numbers = #tpu.dot_dimension_numbers<[1], [0], [0], [1], [0, 0, 1, 1], [], []>} : vector<16x16xf32>, vector<16x8xf32>, vector<16x8xf32> -> vector<16x8xf32>
    %cst_41 = arith.constant dense<0.000000e+00> : vector<16x8xf32>
    %101 = tpu.matmul %97, %98, %cst_41 {dimension_numbers = #tpu.dot_dimension_numbers<[0], [0], [1], [1], [0, 1, 1, 1], [], []>} : vector<16x16xf32>, vector<16x8xf32>, vector<16x8xf32> -> vector<16x8xf32>
    %102 = tpu.concatenate %100, %101 in 1 : vector<16x8xf32>, vector<16x8xf32> -> vector<16x16xf32>
    %103 = arith.addf %93, %102 : vector<16x16xf32>
    %c0_42 = arith.constant 0 : index
    %c0_43 = arith.constant 0 : index
    %104 = arith.index_cast %78 : i32 to index
    %c0_44 = arith.constant 0 : index
    %105 = vector.load %arg7[%c0_42, %c0_43, %104, %c0_44] : memref<1x1x128x16xf32, #tpu.memory_space<vmem>>, vector<1x1x16x16xf32>
    %106 = vector.shape_cast %105 : vector<1x1x16x16xf32> to vector<16x16xf32>
    %107 = vector.shape_cast %103 : vector<16x16xf32> to vector<1x1x16x16xf32>
    tpu.vector_store %arg7[%c0_42, %c0_43, %104, %c0_44], %107 {strides = array<i32>} : memref<1x1x128x16xf32, #tpu.memory_space<vmem>>, vector<1x1x16x16xf32>,
    %c3_i32 = arith.constant 3 : i32
    %c32_i32_45 = arith.constant 32 : i32
    %108 = arith.muli %c3_i32, %c32_i32_45 : i32
    %c16_i32_46 = arith.constant 16 : i32
    %109 = arith.muli %c3_i32, %c16_i32_46 : i32
    %110 = tpu.assume_multiple %108, 8 : i32
    %111 = tpu.assume_multiple %109, 8 : i32
    %112 = arith.index_cast %110 : i32 to index
    %c0_47 = arith.constant 0 : index
    %113 = vector.load %arg8[%112, %c0_47] : memref<256x32xf32, #tpu.memory_space<vmem>>, vector<32x32xf32>
    %114 = vector.extract_strided_slice %113 {offsets = [0, 0], sizes = [16, 32], strides = [1, 1]} : vector<32x32xf32> to vector<16x32xf32>
    %115 = vector.extract_strided_slice %113 {offsets = [16, 0], sizes = [16, 32], strides = [1, 1]} : vector<32x32xf32> to vector<16x32xf32>
    %116 = vector.extract_strided_slice %114 {offsets = [0, 0], sizes = [16, 8], strides = [1, 1]} : vector<16x32xf32> to vector<16x8xf32>
    %117 = vector.extract_strided_slice %115 {offsets = [0, 0], sizes = [16, 8], strides = [1, 1]} : vector<16x32xf32> to vector<16x8xf32>
    %118 = tpu.concatenate %116, %117 in 1 : vector<16x8xf32>, vector<16x8xf32> -> vector<16x16xf32>
    %119 = vector.extract_strided_slice %114 {offsets = [0, 8], sizes = [16, 8], strides = [1, 1]} : vector<16x32xf32> to vector<16x8xf32>
    %120 = vector.extract_strided_slice %115 {offsets = [0, 8], sizes = [16, 8], strides = [1, 1]} : vector<16x32xf32> to vector<16x8xf32>
    %121 = tpu.concatenate %119, %120 in 1 : vector<16x8xf32>, vector<16x8xf32> -> vector<16x16xf32>
    %122 = vector.extract_strided_slice %114 {offsets = [0, 16], sizes = [16, 8], strides = [1, 1]} : vector<16x32xf32> to vector<16x8xf32>
    %123 = vector.extract_strided_slice %115 {offsets = [0, 16], sizes = [16, 8], strides = [1, 1]} : vector<16x32xf32> to vector<16x8xf32>
    %124 = tpu.concatenate %122, %123 in 1 : vector<16x8xf32>, vector<16x8xf32> -> vector<16x16xf32>
    %125 = tpu.concatenate %118, %121, %124 in 0 : vector<16x16xf32>, vector<16x16xf32>, vector<16x16xf32> -> vector<48x16xf32>
    %cst_48 = arith.constant dense<0.000000e+00> : vector<16x16xf32>
    %126 = tpu.matmul %8, %125, %cst_48 {dimension_numbers = #tpu.dot_dimension_numbers<[1], [0], [0], [1], [0, 0, 1, 1], [], []>} : vector<16x48xf32>, vector<48x16xf32>, vector<16x16xf32> -> vector<16x16xf32>
    %c0_49 = arith.constant 0 : index
    %127 = arith.index_cast %c3_i32 : i32 to index
    %c0_50 = arith.constant 0 : index
    %c0_51 = arith.constant 0 : index
    %128 = vector.load %arg3[%c0_49, %127, %c0_50, %c0_51] : memref<1x8x16x16xbf16, #tpu.memory_space<vmem>>, vector<1x1x16x16xbf16>
    %129 = vector.shape_cast %128 : vector<1x1x16x16xbf16> to vector<16x16xbf16>
    %130 = arith.extf %129 : vector<16x16xbf16> to vector<16x16xf32>
    %131 = vector.extract_strided_slice %114 {offsets = [0, 24], sizes = [16, 8], strides = [1, 1]} : vector<16x32xf32> to vector<16x8xf32>
    %132 = vector.extract_strided_slice %115 {offsets = [0, 24], sizes = [16, 8], strides = [1, 1]} : vector<16x32xf32> to vector<16x8xf32>
    %cst_52 = arith.constant dense<0.000000e+00> : vector<16x8xf32>
    %133 = tpu.matmul %130, %132, %cst_52 {dimension_numbers = #tpu.dot_dimension_numbers<[1], [0], [0], [1], [0, 0, 1, 1], [], []>} : vector<16x16xf32>, vector<16x8xf32>, vector<16x8xf32> -> vector<16x8xf32>
    %cst_53 = arith.constant dense<0.000000e+00> : vector<16x8xf32>
    %134 = tpu.matmul %130, %131, %cst_53 {dimension_numbers = #tpu.dot_dimension_numbers<[0], [0], [1], [1], [0, 1, 1, 1], [], []>} : vector<16x16xf32>, vector<16x8xf32>, vector<16x8xf32> -> vector<16x8xf32>
    %135 = tpu.concatenate %133, %134 in 1 : vector<16x8xf32>, vector<16x8xf32> -> vector<16x16xf32>
    %136 = arith.addf %126, %135 : vector<16x16xf32>
    %c0_54 = arith.constant 0 : index
    %c0_55 = arith.constant 0 : index
    %137 = arith.index_cast %111 : i32 to index
    %c0_56 = arith.constant 0 : index
    %138 = vector.load %arg7[%c0_54, %c0_55, %137, %c0_56] : memref<1x1x128x16xf32, #tpu.memory_space<vmem>>, vector<1x1x16x16xf32>
    %139 = vector.shape_cast %138 : vector<1x1x16x16xf32> to vector<16x16xf32>
    %140 = vector.shape_cast %136 : vector<16x16xf32> to vector<1x1x16x16xf32>
    tpu.vector_store %arg7[%c0_54, %c0_55, %137, %c0_56], %140 {strides = array<i32>} : memref<1x1x128x16xf32, #tpu.memory_space<vmem>>, vector<1x1x16x16xf32>,
    %c4_i32 = arith.constant 4 : i32
    %c32_i32_57 = arith.constant 32 : i32
    %141 = arith.muli %c4_i32, %c32_i32_57 : i32
    %c16_i32_58 = arith.constant 16 : i32
    %142 = arith.muli %c4_i32, %c16_i32_58 : i32
    %143 = tpu.assume_multiple %141, 8 : i32
    %144 = tpu.assume_multiple %142, 8 : i32
    %145 = arith.index_cast %143 : i32 to index
    %c0_59 = arith.constant 0 : index
    %146 = vector.load %arg8[%145, %c0_59] : memref<256x32xf32, #tpu.memory_space<vmem>>, vector<32x32xf32>
    %147 = vector.extract_strided_slice %146 {offsets = [0, 0], sizes = [16, 32], strides = [1, 1]} : vector<32x32xf32> to vector<16x32xf32>
    %148 = vector.extract_strided_slice %146 {offsets = [16, 0], sizes = [16, 32], strides = [1, 1]} : vector<32x32xf32> to vector<16x32xf32>
    %149 = vector.extract_strided_slice %147 {offsets = [0, 0], sizes = [16, 8], strides = [1, 1]} : vector<16x32xf32> to vector<16x8xf32>
    %150 = vector.extract_strided_slice %148 {offsets = [0, 0], sizes = [16, 8], strides = [1, 1]} : vector<16x32xf32> to vector<16x8xf32>
    %151 = tpu.concatenate %149, %150 in 1 : vector<16x8xf32>, vector<16x8xf32> -> vector<16x16xf32>
    %152 = vector.extract_strided_slice %147 {offsets = [0, 8], sizes = [16, 8], strides = [1, 1]} : vector<16x32xf32> to vector<16x8xf32>
    %153 = vector.extract_strided_slice %148 {offsets = [0, 8], sizes = [16, 8], strides = [1, 1]} : vector<16x32xf32> to vector<16x8xf32>
    %154 = tpu.concatenate %152, %153 in 1 : vector<16x8xf32>, vector<16x8xf32> -> vector<16x16xf32>
    %155 = vector.extract_strided_slice %147 {offsets = [0, 16], sizes = [16, 8], strides = [1, 1]} : vector<16x32xf32> to vector<16x8xf32>
    %156 = vector.extract_strided_slice %148 {offsets = [0, 16], sizes = [16, 8], strides = [1, 1]} : vector<16x32xf32> to vector<16x8xf32>
    %157 = tpu.concatenate %155, %156 in 1 : vector<16x8xf32>, vector<16x8xf32> -> vector<16x16xf32>
    %158 = tpu.concatenate %151, %154, %157 in 0 : vector<16x16xf32>, vector<16x16xf32>, vector<16x16xf32> -> vector<48x16xf32>
    %cst_60 = arith.constant dense<0.000000e+00> : vector<16x16xf32>
    %159 = tpu.matmul %8, %158, %cst_60 {dimension_numbers = #tpu.dot_dimension_numbers<[1], [0], [0], [1], [0, 0, 1, 1], [], []>} : vector<16x48xf32>, vector<48x16xf32>, vector<16x16xf32> -> vector<16x16xf32>
    %c0_61 = arith.constant 0 : index
    %160 = arith.index_cast %c4_i32 : i32 to index
    %c0_62 = arith.constant 0 : index
    %c0_63 = arith.constant 0 : index
    %161 = vector.load %arg3[%c0_61, %160, %c0_62, %c0_63] : memref<1x8x16x16xbf16, #tpu.memory_space<vmem>>, vector<1x1x16x16xbf16>
    %162 = vector.shape_cast %161 : vector<1x1x16x16xbf16> to vector<16x16xbf16>
    %163 = arith.extf %162 : vector<16x16xbf16> to vector<16x16xf32>
    %164 = vector.extract_strided_slice %147 {offsets = [0, 24], sizes = [16, 8], strides = [1, 1]} : vector<16x32xf32> to vector<16x8xf32>
    %165 = vector.extract_strided_slice %148 {offsets = [0, 24], sizes = [16, 8], strides = [1, 1]} : vector<16x32xf32> to vector<16x8xf32>
    %cst_64 = arith.constant dense<0.000000e+00> : vector<16x8xf32>
    %166 = tpu.matmul %163, %165, %cst_64 {dimension_numbers = #tpu.dot_dimension_numbers<[1], [0], [0], [1], [0, 0, 1, 1], [], []>} : vector<16x16xf32>, vector<16x8xf32>, vector<16x8xf32> -> vector<16x8xf32>
    %cst_65 = arith.constant dense<0.000000e+00> : vector<16x8xf32>
    %167 = tpu.matmul %163, %164, %cst_65 {dimension_numbers = #tpu.dot_dimension_numbers<[0], [0], [1], [1], [0, 1, 1, 1], [], []>} : vector<16x16xf32>, vector<16x8xf32>, vector<16x8xf32> -> vector<16x8xf32>
    %168 = tpu.concatenate %166, %167 in 1 : vector<16x8xf32>, vector<16x8xf32> -> vector<16x16xf32>
    %169 = arith.addf %159, %168 : vector<16x16xf32>
    %c0_66 = arith.constant 0 : index
    %c0_67 = arith.constant 0 : index
    %170 = arith.index_cast %144 : i32 to index
    %c0_68 = arith.constant 0 : index
    %171 = vector.load %arg7[%c0_66, %c0_67, %170, %c0_68] : memref<1x1x128x16xf32, #tpu.memory_space<vmem>>, vector<1x1x16x16xf32>
    %172 = vector.shape_cast %171 : vector<1x1x16x16xf32> to vector<16x16xf32>
    %173 = vector.shape_cast %169 : vector<16x16xf32> to vector<1x1x16x16xf32>
    tpu.vector_store %arg7[%c0_66, %c0_67, %170, %c0_68], %173 {strides = array<i32>} : memref<1x1x128x16xf32, #tpu.memory_space<vmem>>, vector<1x1x16x16xf32>,
    %c5_i32 = arith.constant 5 : i32
    %c32_i32_69 = arith.constant 32 : i32
    %174 = arith.muli %c5_i32, %c32_i32_69 : i32
    %c16_i32_70 = arith.constant 16 : i32
    %175 = arith.muli %c5_i32, %c16_i32_70 : i32
    %176 = tpu.assume_multiple %174, 8 : i32
    %177 = tpu.assume_multiple %175, 8 : i32
    %178 = arith.index_cast %176 : i32 to index
    %c0_71 = arith.constant 0 : index
    %179 = vector.load %arg8[%178, %c0_71] : memref<256x32xf32, #tpu.memory_space<vmem>>, vector<32x32xf32>
    %180 = vector.extract_strided_slice %179 {offsets = [0, 0], sizes = [16, 32], strides = [1, 1]} : vector<32x32xf32> to vector<16x32xf32>
    %181 = vector.extract_strided_slice %179 {offsets = [16, 0], sizes = [16, 32], strides = [1, 1]} : vector<32x32xf32> to vector<16x32xf32>
    %182 = vector.extract_strided_slice %180 {offsets = [0, 0], sizes = [16, 8], strides = [1, 1]} : vector<16x32xf32> to vector<16x8xf32>
    %183 = vector.extract_strided_slice %181 {offsets = [0, 0], sizes = [16, 8], strides = [1, 1]} : vector<16x32xf32> to vector<16x8xf32>
    %184 = tpu.concatenate %182, %183 in 1 : vector<16x8xf32>, vector<16x8xf32> -> vector<16x16xf32>
    %185 = vector.extract_strided_slice %180 {offsets = [0, 8], sizes = [16, 8], strides = [1, 1]} : vector<16x32xf32> to vector<16x8xf32>
    %186 = vector.extract_strided_slice %181 {offsets = [0, 8], sizes = [16, 8], strides = [1, 1]} : vector<16x32xf32> to vector<16x8xf32>
    %187 = tpu.concatenate %185, %186 in 1 : vector<16x8xf32>, vector<16x8xf32> -> vector<16x16xf32>
    %188 = vector.extract_strided_slice %180 {offsets = [0, 16], sizes = [16, 8], strides = [1, 1]} : vector<16x32xf32> to vector<16x8xf32>
    %189 = vector.extract_strided_slice %181 {offsets = [0, 16], sizes = [16, 8], strides = [1, 1]} : vector<16x32xf32> to vector<16x8xf32>
    %190 = tpu.concatenate %188, %189 in 1 : vector<16x8xf32>, vector<16x8xf32> -> vector<16x16xf32>
    %191 = tpu.concatenate %184, %187, %190 in 0 : vector<16x16xf32>, vector<16x16xf32>, vector<16x16xf32> -> vector<48x16xf32>
    %cst_72 = arith.constant dense<0.000000e+00> : vector<16x16xf32>
    %192 = tpu.matmul %8, %191, %cst_72 {dimension_numbers = #tpu.dot_dimension_numbers<[1], [0], [0], [1], [0, 0, 1, 1], [], []>} : vector<16x48xf32>, vector<48x16xf32>, vector<16x16xf32> -> vector<16x16xf32>
    %c0_73 = arith.constant 0 : index
    %193 = arith.index_cast %c5_i32 : i32 to index
    %c0_74 = arith.constant 0 : index
    %c0_75 = arith.constant 0 : index
    %194 = vector.load %arg3[%c0_73, %193, %c0_74, %c0_75] : memref<1x8x16x16xbf16, #tpu.memory_space<vmem>>, vector<1x1x16x16xbf16>
    %195 = vector.shape_cast %194 : vector<1x1x16x16xbf16> to vector<16x16xbf16>
    %196 = arith.extf %195 : vector<16x16xbf16> to vector<16x16xf32>
    %197 = vector.extract_strided_slice %180 {offsets = [0, 24], sizes = [16, 8], strides = [1, 1]} : vector<16x32xf32> to vector<16x8xf32>
    %198 = vector.extract_strided_slice %181 {offsets = [0, 24], sizes = [16, 8], strides = [1, 1]} : vector<16x32xf32> to vector<16x8xf32>
    %cst_76 = arith.constant dense<0.000000e+00> : vector<16x8xf32>
    %199 = tpu.matmul %196, %198, %cst_76 {dimension_numbers = #tpu.dot_dimension_numbers<[1], [0], [0], [1], [0, 0, 1, 1], [], []>} : vector<16x16xf32>, vector<16x8xf32>, vector<16x8xf32> -> vector<16x8xf32>
    %cst_77 = arith.constant dense<0.000000e+00> : vector<16x8xf32>
    %200 = tpu.matmul %196, %197, %cst_77 {dimension_numbers = #tpu.dot_dimension_numbers<[0], [0], [1], [1], [0, 1, 1, 1], [], []>} : vector<16x16xf32>, vector<16x8xf32>, vector<16x8xf32> -> vector<16x8xf32>
    %201 = tpu.concatenate %199, %200 in 1 : vector<16x8xf32>, vector<16x8xf32> -> vector<16x16xf32>
    %202 = arith.addf %192, %201 : vector<16x16xf32>
    %c0_78 = arith.constant 0 : index
    %c0_79 = arith.constant 0 : index
    %203 = arith.index_cast %177 : i32 to index
    %c0_80 = arith.constant 0 : index
    %204 = vector.load %arg7[%c0_78, %c0_79, %203, %c0_80] : memref<1x1x128x16xf32, #tpu.memory_space<vmem>>, vector<1x1x16x16xf32>
    %205 = vector.shape_cast %204 : vector<1x1x16x16xf32> to vector<16x16xf32>
    %206 = vector.shape_cast %202 : vector<16x16xf32> to vector<1x1x16x16xf32>
    tpu.vector_store %arg7[%c0_78, %c0_79, %203, %c0_80], %206 {strides = array<i32>} : memref<1x1x128x16xf32, #tpu.memory_space<vmem>>, vector<1x1x16x16xf32>,
    %c6_i32 = arith.constant 6 : i32
    %c32_i32_81 = arith.constant 32 : i32
    %207 = arith.muli %c6_i32, %c32_i32_81 : i32
    %c16_i32_82 = arith.constant 16 : i32
    %208 = arith.muli %c6_i32, %c16_i32_82 : i32
    %209 = tpu.assume_multiple %207, 8 : i32
    %210 = tpu.assume_multiple %208, 8 : i32
    %211 = arith.index_cast %209 : i32 to index
    %c0_83 = arith.constant 0 : index
    %212 = vector.load %arg8[%211, %c0_83] : memref<256x32xf32, #tpu.memory_space<vmem>>, vector<32x32xf32>
    %213 = vector.extract_strided_slice %212 {offsets = [0, 0], sizes = [16, 32], strides = [1, 1]} : vector<32x32xf32> to vector<16x32xf32>
    %214 = vector.extract_strided_slice %212 {offsets = [16, 0], sizes = [16, 32], strides = [1, 1]} : vector<32x32xf32> to vector<16x32xf32>
    %215 = vector.extract_strided_slice %213 {offsets = [0, 0], sizes = [16, 8], strides = [1, 1]} : vector<16x32xf32> to vector<16x8xf32>
    %216 = vector.extract_strided_slice %214 {offsets = [0, 0], sizes = [16, 8], strides = [1, 1]} : vector<16x32xf32> to vector<16x8xf32>
    %217 = tpu.concatenate %215, %216 in 1 : vector<16x8xf32>, vector<16x8xf32> -> vector<16x16xf32>
    %218 = vector.extract_strided_slice %213 {offsets = [0, 8], sizes = [16, 8], strides = [1, 1]} : vector<16x32xf32> to vector<16x8xf32>
    %219 = vector.extract_strided_slice %214 {offsets = [0, 8], sizes = [16, 8], strides = [1, 1]} : vector<16x32xf32> to vector<16x8xf32>
    %220 = tpu.concatenate %218, %219 in 1 : vector<16x8xf32>, vector<16x8xf32> -> vector<16x16xf32>
    %221 = vector.extract_strided_slice %213 {offsets = [0, 16], sizes = [16, 8], strides = [1, 1]} : vector<16x32xf32> to vector<16x8xf32>
    %222 = vector.extract_strided_slice %214 {offsets = [0, 16], sizes = [16, 8], strides = [1, 1]} : vector<16x32xf32> to vector<16x8xf32>
    %223 = tpu.concatenate %221, %222 in 1 : vector<16x8xf32>, vector<16x8xf32> -> vector<16x16xf32>
    %224 = tpu.concatenate %217, %220, %223 in 0 : vector<16x16xf32>, vector<16x16xf32>, vector<16x16xf32> -> vector<48x16xf32>
    %cst_84 = arith.constant dense<0.000000e+00> : vector<16x16xf32>
    %225 = tpu.matmul %8, %224, %cst_84 {dimension_numbers = #tpu.dot_dimension_numbers<[1], [0], [0], [1], [0, 0, 1, 1], [], []>} : vector<16x48xf32>, vector<48x16xf32>, vector<16x16xf32> -> vector<16x16xf32>
    %c0_85 = arith.constant 0 : index
    %226 = arith.index_cast %c6_i32 : i32 to index
    %c0_86 = arith.constant 0 : index
    %c0_87 = arith.constant 0 : index
    %227 = vector.load %arg3[%c0_85, %226, %c0_86, %c0_87] : memref<1x8x16x16xbf16, #tpu.memory_space<vmem>>, vector<1x1x16x16xbf16>
    %228 = vector.shape_cast %227 : vector<1x1x16x16xbf16> to vector<16x16xbf16>
    %229 = arith.extf %228 : vector<16x16xbf16> to vector<16x16xf32>
    %230 = vector.extract_strided_slice %213 {offsets = [0, 24], sizes = [16, 8], strides = [1, 1]} : vector<16x32xf32> to vector<16x8xf32>
    %231 = vector.extract_strided_slice %214 {offsets = [0, 24], sizes = [16, 8], strides = [1, 1]} : vector<16x32xf32> to vector<16x8xf32>
    %cst_88 = arith.constant dense<0.000000e+00> : vector<16x8xf32>
    %232 = tpu.matmul %229, %231, %cst_88 {dimension_numbers = #tpu.dot_dimension_numbers<[1], [0], [0], [1], [0, 0, 1, 1], [], []>} : vector<16x16xf32>, vector<16x8xf32>, vector<16x8xf32> -> vector<16x8xf32>
    %cst_89 = arith.constant dense<0.000000e+00> : vector<16x8xf32>
    %233 = tpu.matmul %229, %230, %cst_89 {dimension_numbers = #tpu.dot_dimension_numbers<[0], [0], [1], [1], [0, 1, 1, 1], [], []>} : vector<16x16xf32>, vector<16x8xf32>, vector<16x8xf32> -> vector<16x8xf32>
    %234 = tpu.concatenate %232, %233 in 1 : vector<16x8xf32>, vector<16x8xf32> -> vector<16x16xf32>
    %235 = arith.addf %225, %234 : vector<16x16xf32>
    %c0_90 = arith.constant 0 : index
    %c0_91 = arith.constant 0 : index
    %236 = arith.index_cast %210 : i32 to index
    %c0_92 = arith.constant 0 : index
    %237 = vector.load %arg7[%c0_90, %c0_91, %236, %c0_92] : memref<1x1x128x16xf32, #tpu.memory_space<vmem>>, vector<1x1x16x16xf32>
    %238 = vector.shape_cast %237 : vector<1x1x16x16xf32> to vector<16x16xf32>
    %239 = vector.shape_cast %235 : vector<16x16xf32> to vector<1x1x16x16xf32>
    tpu.vector_store %arg7[%c0_90, %c0_91, %236, %c0_92], %239 {strides = array<i32>} : memref<1x1x128x16xf32, #tpu.memory_space<vmem>>, vector<1x1x16x16xf32>,
    %c7_i32 = arith.constant 7 : i32
    %c32_i32_93 = arith.constant 32 : i32
    %240 = arith.muli %c7_i32, %c32_i32_93 : i32
    %c16_i32_94 = arith.constant 16 : i32
    %241 = arith.muli %c7_i32, %c16_i32_94 : i32
    %242 = tpu.assume_multiple %240, 8 : i32
    %243 = tpu.assume_multiple %241, 8 : i32
    %244 = arith.index_cast %242 : i32 to index
    %c0_95 = arith.constant 0 : index
    %245 = vector.load %arg8[%244, %c0_95] : memref<256x32xf32, #tpu.memory_space<vmem>>, vector<32x32xf32>
    %246 = vector.extract_strided_slice %245 {offsets = [0, 0], sizes = [16, 32], strides = [1, 1]} : vector<32x32xf32> to vector<16x32xf32>
    %247 = vector.extract_strided_slice %245 {offsets = [16, 0], sizes = [16, 32], strides = [1, 1]} : vector<32x32xf32> to vector<16x32xf32>
    %248 = vector.extract_strided_slice %246 {offsets = [0, 0], sizes = [16, 8], strides = [1, 1]} : vector<16x32xf32> to vector<16x8xf32>
    %249 = vector.extract_strided_slice %247 {offsets = [0, 0], sizes = [16, 8], strides = [1, 1]} : vector<16x32xf32> to vector<16x8xf32>
    %250 = tpu.concatenate %248, %249 in 1 : vector<16x8xf32>, vector<16x8xf32> -> vector<16x16xf32>
    %251 = vector.extract_strided_slice %246 {offsets = [0, 8], sizes = [16, 8], strides = [1, 1]} : vector<16x32xf32> to vector<16x8xf32>
    %252 = vector.extract_strided_slice %247 {offsets = [0, 8], sizes = [16, 8], strides = [1, 1]} : vector<16x32xf32> to vector<16x8xf32>
    %253 = tpu.concatenate %251, %252 in 1 : vector<16x8xf32>, vector<16x8xf32> -> vector<16x16xf32>
    %254 = vector.extract_strided_slice %246 {offsets = [0, 16], sizes = [16, 8], strides = [1, 1]} : vector<16x32xf32> to vector<16x8xf32>
    %255 = vector.extract_strided_slice %247 {offsets = [0, 16], sizes = [16, 8], strides = [1, 1]} : vector<16x32xf32> to vector<16x8xf32>
    %256 = tpu.concatenate %254, %255 in 1 : vector<16x8xf32>, vector<16x8xf32> -> vector<16x16xf32>
    %257 = tpu.concatenate %250, %253, %256 in 0 : vector<16x16xf32>, vector<16x16xf32>, vector<16x16xf32> -> vector<48x16xf32>
    %cst_96 = arith.constant dense<0.000000e+00> : vector<16x16xf32>
    %258 = tpu.matmul %8, %257, %cst_96 {dimension_numbers = #tpu.dot_dimension_numbers<[1], [0], [0], [1], [0, 0, 1, 1], [], []>} : vector<16x48xf32>, vector<48x16xf32>, vector<16x16xf32> -> vector<16x16xf32>
    %c0_97 = arith.constant 0 : index
    %259 = arith.index_cast %c7_i32 : i32 to index
    %c0_98 = arith.constant 0 : index
    %c0_99 = arith.constant 0 : index
    %260 = vector.load %arg3[%c0_97, %259, %c0_98, %c0_99] : memref<1x8x16x16xbf16, #tpu.memory_space<vmem>>, vector<1x1x16x16xbf16>
    %261 = vector.shape_cast %260 : vector<1x1x16x16xbf16> to vector<16x16xbf16>
    %262 = arith.extf %261 : vector<16x16xbf16> to vector<16x16xf32>
    %263 = vector.extract_strided_slice %246 {offsets = [0, 24], sizes = [16, 8], strides = [1, 1]} : vector<16x32xf32> to vector<16x8xf32>
    %264 = vector.extract_strided_slice %247 {offsets = [0, 24], sizes = [16, 8], strides = [1, 1]} : vector<16x32xf32> to vector<16x8xf32>
    %cst_100 = arith.constant dense<0.000000e+00> : vector<16x8xf32>
    %265 = tpu.matmul %262, %264, %cst_100 {dimension_numbers = #tpu.dot_dimension_numbers<[1], [0], [0], [1], [0, 0, 1, 1], [], []>} : vector<16x16xf32>, vector<16x8xf32>, vector<16x8xf32> -> vector<16x8xf32>
    %cst_101 = arith.constant dense<0.000000e+00> : vector<16x8xf32>
    %266 = tpu.matmul %262, %263, %cst_101 {dimension_numbers = #tpu.dot_dimension_numbers<[0], [0], [1], [1], [0, 1, 1, 1], [], []>} : vector<16x16xf32>, vector<16x8xf32>, vector<16x8xf32> -> vector<16x8xf32>
    %267 = tpu.concatenate %265, %266 in 1 : vector<16x8xf32>, vector<16x8xf32> -> vector<16x16xf32>
    %268 = arith.addf %258, %267 : vector<16x16xf32>
    %c0_102 = arith.constant 0 : index
    %c0_103 = arith.constant 0 : index
    %269 = arith.index_cast %243 : i32 to index
    %c0_104 = arith.constant 0 : index
    %270 = vector.load %arg7[%c0_102, %c0_103, %269, %c0_104] : memref<1x1x128x16xf32, #tpu.memory_space<vmem>>, vector<1x1x16x16xf32>
    %271 = vector.shape_cast %270 : vector<1x1x16x16xf32> to vector<16x16xf32>
    %272 = vector.shape_cast %268 : vector<16x16xf32> to vector<1x1x16x16xf32>
    tpu.vector_store %arg7[%c0_102, %c0_103, %269, %c0_104], %272 {strides = array<i32>} : memref<1x1x128x16xf32, #tpu.memory_space<vmem>>, vector<1x1x16x16xf32>,
    %c8_i32 = arith.constant 8 : i32
    return
  }
  func.func @transform_0(%arg0: i32, %arg1: i32) -> (i32, i32, i32, i32) {
    %c0_i32 = arith.constant 0 : i32
    %c0_i32_0 = arith.constant 0 : i32
    %c0_i32_1 = arith.constant 0 : i32
    return %arg0, %arg1, %c0_i32, %c0_i32_0 : i32, i32, i32, i32
  }
  func.func @transform_1(%arg0: i32, %arg1: i32) -> (i32, i32, i32, i32) {
    %c0_i32 = arith.constant 0 : i32
    %c0_i32_0 = arith.constant 0 : i32
    %c0_i32_1 = arith.constant 0 : i32
    return %arg0, %arg1, %c0_i32, %c0_i32_0 : i32, i32, i32, i32
  }
  func.func @transform_2(%arg0: i32, %arg1: i32) -> (i32, i32) {
    %c0_i32 = arith.constant 0 : i32
    %c0_i32_0 = arith.constant 0 : i32
    %c0_i32_1 = arith.constant 0 : i32
    return %c0_i32, %c0_i32_0 : i32, i32
  }
  func.func @transform_3(%arg0: i32, %arg1: i32) -> (i32, i32) {
    %c0_i32 = arith.constant 0 : i32
    %c0_i32_0 = arith.constant 0 : i32
    %c0_i32_1 = arith.constant 0 : i32
    return %c0_i32, %c0_i32_0 : i32, i32
  }
  func.func @transform_4(%arg0: i32, %arg1: i32) -> (i32, i32) {
    %c0_i32 = arith.constant 0 : i32
    %c0_i32_0 = arith.constant 0 : i32
    %c0_i32_1 = arith.constant 0 : i32
    return %c0_i32, %c0_i32_0 : i32, i32
  }
  func.func @transform_5(%arg0: i32, %arg1: i32) -> (i32, i32, i32, i32) {
    %c0_i32 = arith.constant 0 : i32
    %c0_i32_0 = arith.constant 0 : i32
    %c0_i32_1 = arith.constant 0 : i32
    return %arg0, %arg1, %c0_i32, %c0_i32_0 : i32, i32, i32, i32
  }
}

</mosaic_0001>

<bundles_post_ra>
// kernel: spatial_dyadic_relational_gc.1
= control target key start
LH: loop header
LB: loop body
LE: loop exit
PB: predicated region body
PF: predicated region fallthrough
CT: control target
= control target key end

     0   :  { %s4628_s18 = smov 0   ;;  %s4630_s19 = smov 0   ;;  %s5399_s0 = inlined_call_operand.vmem [shape: bf16[2,1,256,4], index: 0, kind: input, shape index: {}]   ;;  %s5400_s1 = inlined_call_operand.vmem [shape: bf16[2,8,16,16], index: 1, kind: input, shape index: {}]   ;;  %s5401_s2 = inlined_call_operand.vmem [shape: f32[16,48], index: 2, kind: input, shape index: {}]   ;;  %s5402_s3 = inlined_call_operand.vmem [shape: bf16[4,32], index: 3, kind: input, shape index: {}]   ;;  %s5403_s4 = inlined_call_operand.vmem [shape: f32[1,32], index: 4, kind: input, shape index: {}]   ;;  %s5404_s5 = inlined_call_operand.vmem [shape: f32[2,1,128,16], index: 5, kind: output, shape index: {}]  }
   0x1   :  { %s4632_s20 = smov 0  }
   0x2 LB: > { %s27_s21 = sadd.s32 1, %s4588_s19  ;;  %p3497_p0 = scmp.ge.s32.totalorder %s4592_s20, 1  ;;  %s4592_s20 = sphi %s4632_s20, %s15_s20   ;;  %s4588_s19 = sphi %s4630_s19, %s5429_s19   ;;  %s4584_s18 = sphi %s4628_s18, %s5428_s18  }
   0x3   : > { %p29_p1 = scmp.ge.s32.totalorder %s27_s21, 2  ;;  %p225_p2 = scmp.lt.s32.totalorder %s4592_s20, 3 }
   0x5   : > { %s5431_s21 = smov (%p29_p1, %s27_s21), 0  ;;  %p226_p3 = pnand %p3497_p0, %p225_p2 }
   0x7   : > { %229 = sbr.rel (%p226_p3) target bundleno = 899 (0x383), region = 40 }
   0xe   : > { %v333_v0 = vld [vmem:[%s5402_s3] sm:$0x3]  ;;  %vm470_vm0 = vcmask 1041408   ;;  %p271_p4 = scmp.lt.s32.totalorder %s4584_s18, 1  ;;  %vm421_vm1 = vcmask 31744   ;;  %vm635_vm2 = vcmask 261120  }
   0xf   : > { %4228 = vmatprep.subr.msk.bf16.mxu0 %vm470_vm0, %v333_v0  ;;  %v472_v1 = vsel %vm470_vm0, %v333_v0, 0  ;;  %v4722_v28 = vld [vmem:[%s5403_s4] ss:$0 sm:$0xff]  ;;  %s4594_s9 = smov 120   ;;  %s4595_s10 = smov 8   ;;  %vm719_vm3 = vcmask 130048  }
  0x10   : > { %3803 = vmatpush3.bf16.msra.mxu0 %v472_v1  ;;  %s5433_s18 = smov (!%p271_p4, %s4584_s18), 1  ;;  %s4596_s11 = smov 104   ;;  %vm682_vm4 = vcmask 64512   ;;  %vm930_vm5 = vcmask 392192  }
  0x11   : > { %s3615_s24 = sshll.u32 %s5433_s18, 7  ;;  %s3616_s28 = sshll.u32 %s5433_s18, 6 }
  0x12   : > { %s4657_s27 = scalar_lea.vmem %s5399_s0, %s3615_s24  ;;  %s4673_s6 = scalar_lea.vmem %s5400_s1, %s3616_s28 }
  0x13   : > { %v4554_v2 = vld [vmem:[%s4657_s27] sm:$0xff]   ;;  %v4555_v3 = vld [vmem:[%s4657_s27 + $0x8] sm:$0xff]   ;;  %v4556_v4 = vld [vmem:[%s4657_s27 + $0x10] sm:$0xff]   ;;  %s4597_s12 = smov 112   ;;  %s5313_s23 = scalar_lea.vmem %s5404_s5, %s3615_s24 }
  0x14   : > { %3804 = vmatprep.mubr.msk.bf16.mxu0 %vm421_vm1, %v4554_v2  ;;  %v4557_v5 = vld [vmem:[%s4657_s27 + $0x18] sm:$0xff]   ;;  %v4558_v6 = vld [vmem:[%s4657_s27 + $0x20] sm:$0xff]   ;;  %v4559_v7 = vld [vmem:[%s4657_s27 + $0x28] sm:$0xff]  }
  0x15   : > { %3805 = vmatmul.mubr.msk.bf16.vlgmr.msra.gmra.mrb[0].mxu0 %vm421_vm1, %v4555_v3  ;;  %v4560_v8 = vld [vmem:[%s4657_s27 + $0x30] sm:$0xff]   ;;  %v4678_v9 = vld [vmem:[%s4673_s6] sm:$0xff]   ;;  %v4681_v10 = vld [vmem:[%s4673_s6 + $0x8] sm:$0xff]  }
  0x16   : > { %3808 = vmatprep.mubr.msk.bf16.mxu0 %vm421_vm1, %v4556_v4  ;;  %v3620_v11 = vunpack.c.l.bf16 %v4678_v9  ;;  %v5410_v12 = vunpack.c.l.bf16 %v4681_v10  ;;  %v3621_v13 = vunpack.c.h.bf16 %v4678_v9  ;;  %v5409_v14 = vunpack.c.h.bf16 %v4681_v10  ;;  %v4561_v17 = vld [vmem:[%s4657_s27 + $0x38] sm:$0xff]   ;;  %v4562_v18 = vld [vmem:[%s4657_s27 + $0x40] sm:$0xff]   ;;  %v4563_v19 = vld [vmem:[%s4657_s27 + $0x48] sm:$0xff]  }
  0x17   : > { %v4564_v20 = vld [vmem:[%s4657_s27 + $0x50] sm:$0xff]   ;;  %v4565_v21 = vld [vmem:[%s4657_s27 + $0x58] sm:$0xff]   ;;  %v4566_v22 = vld [vmem:[%s4657_s27 + $0x60] sm:$0xff]  }
  0x18   : > { %v4258_v15 = vpack.i.bf16 %v5410_v12, %v3620_v11  ;;  %v4260_v16 = vpack.i.bf16 %v5409_v14, %v3621_v13  ;;  %v4567_v23 = vld [vmem:[%s4657_s27 + $0x68] sm:$0xff]   ;;  %v4568_v24 = vld [vmem:[%s4657_s27 + $0x70] sm:$0xff]   ;;  %v4569_v25 = vld [vmem:[%s4657_s27 + $0x78] sm:$0xff]  }
  0x1a   : > { %4259 = vxpose.xlu1.b32.start [1/2] (short) (narrow) %v4258_v15, 16 }
  0x1d   : > { %3809 = vmatmul.mubr.msk.bf16.gmra.mrb[4].mxu0 %vm421_vm1, %v4557_v5 }
  0x1e   : > { %3812 = vmatprep.mubr.msk.bf16.mxu0 %vm421_vm1, %v4558_v6  ;;  %4261 = vxpose.xlu1.b32.end [2/2] (short) (narrow) %v4260_v16, 16 }
  0x25   : > { %3813 = vmatmul.mubr.msk.bf16.gmra.mrb[8].mxu0 %vm421_vm1, %v4559_v7 }
  0x26   : > { %3816 = vmatprep.mubr.msk.bf16.mxu0 %vm421_vm1, %v4560_v8 }
  0x2d   : > { %3817 = vmatmul.mubr.msk.bf16.gmra.mrb[12].mxu0 %vm421_vm1, %v4561_v17 }
  0x2e   : > { %3820 = vmatprep.mubr.msk.bf16.mxu0 %vm421_vm1, %v4562_v18 }
  0x35   : > { %3821 = vmatmul.mubr.msk.bf16.gmra.mrb[16].mxu0 %vm421_vm1, %v4563_v19 }
  0x36   : > { %3824 = vmatprep.mubr.msk.bf16.mxu0 %vm421_vm1, %v4564_v20 }
  0x3d   : > { %3825 = vmatmul.mubr.msk.bf16.gmra.mrb[20].mxu0 %vm421_vm1, %v4565_v21 }
  0x3e   : > { %3828 = vmatprep.mubr.msk.bf16.mxu0 %vm421_vm1, %v4566_v22 }
  0x45   : > { %3829 = vmatmul.mubr.msk.bf16.gmra.mrb[24].mxu0 %vm421_vm1, %v4567_v23 }
  0x46   : > { %3832 = vmatprep.mubr.msk.bf16.mxu0 %vm421_vm1, %v4568_v24 }
  0x4d   : > { %3833 = vmatmul.mubr.msk.bf16.gmra.mrb[28].mxu0 %vm421_vm1, %v4569_v25 }
  0x4e   : > { %3840 = vmatprep.mubr.msk.f32.mxu0 %vm719_vm3, %v3620_v11 }
  0x9a   : > { %v4715_v26 = vpop.trf.xlu1 }
  0x9b   : > { %v4263_v58 = vunpack.i.l.bf16 %v4715_v26 }
  0x9d   : > { %3847 = vmatprep.mubr.msk.f32.mxu1 %vm719_vm3, %v4263_v58 }
  0x9e   : > { %v4717_v27 = vpop.trf.xlu1 }
  0x9f   : > { %v4268_v9 = vunpack.i.l.bf16 %v4717_v27 }
  0xe8   : > { %v3806_v29 = vpop.f32.mrb[0].mxu0 }
  0xe9   : > { %v517_v30 = vadd.f32 %v3806_v29, %v4722_v28  ;;  %v508_v31 = vpop.f32.mrb[1].mxu0 }
  0xea   : > { %v509_v32 = vadd.f32 %v4722_v28, %v508_v31  ;;  %v3807_v33 = vpop.f32.mrb[2].mxu0 }
  0xeb   : > { %638 = vst.msk [vmem:[#allocation2 + $0x10] sm:$0xff] %vm635_vm2, %v517_v30  ;;  %v520_v34 = vadd.f32 %v3807_v33, %v4722_v28  ;;  %v511_v35 = vpop.f32.mrb[3].mxu0 }
  0xec   : > { %636 = vst.msk [vmem:[#allocation2] sm:$0xff] %vm635_vm2, %v509_v32  ;;  %v512_v36 = vadd.f32 %v4722_v28, %v511_v35 }
  0xed   : > { %639 = vst.msk [vmem:[#allocation2 + $0x18] sm:$0xff] %vm635_vm2, %v520_v34 }
  0xee   : > { %637 = vst.msk [vmem:[#allocation2 + $0x8] sm:$0xff] %vm635_vm2, %v512_v36 }
  0xf0   : > { %v3810_v37 = vpop.f32.mrb[4].mxu0 }
  0xf1   : > { %v533_v38 = vadd.f32 %v3810_v37, %v4722_v28  ;;  %v524_v39 = vpop.f32.mrb[5].mxu0 }
  0xf2   : > { %v525_v40 = vadd.f32 %v4722_v28, %v524_v39  ;;  %v3811_v41 = vpop.f32.mrb[6].mxu0  ;;  %v4737_v44 = vld [vmem:[#allocation2 + $0x10] sm:$0xff] }
  0xf3   : > { %642 = vst.msk [vmem:[#allocation2 + $0x30] sm:$0xff] %vm635_vm2, %v533_v38  ;;  %v536_v42 = vadd.f32 %v3811_v41, %v4722_v28  ;;  %v527_v43 = vpop.f32.mrb[7].mxu0  ;;  %v4750_v50 = vld [vmem:[#allocation2] sm:$0xff] }
  0xf4   : > { %640 = vst.msk [vmem:[#allocation2 + $0x20] sm:$0xff] %vm635_vm2, %v525_v40  ;;  %v4739_v45 = vld [vmem:[#allocation2 + $0x18] sm:$0xff]  ;;  %v528_v46 = vadd.f32 %v4722_v28, %v527_v43 }
  0xf5   : > { %643 = vst.msk [vmem:[#allocation2 + $0x38] sm:$0xff] %vm635_vm2, %v536_v42  ;;  %v4277_v47 = vpack.i.bf16 %v4739_v45, %v4737_v44  ;;  %v4746_v48 = vld [vmem:[#allocation2 + $0x8] sm:$0xff] }
  0xf6   : > { %641 = vst.msk [vmem:[#allocation2 + $0x28] sm:$0xff] %vm635_vm2, %v528_v46  ;;  %v4292_v53 = vpack.i.bf16 %v4746_v48, %v4750_v50 }
  0xf7   : > { %4278 = vrot.lane.b32.xlu1 %v4277_v47, %s4594_s9  ;;  %4273 = vrot.lane.b32.xlu0 %v4277_v47, %s4595_s10 }
  0xf8   : > { %v3814_v49 = vpop.f32.mrb[8].mxu0 }
  0xf9   : > { %v549_v51 = vadd.f32 %v3814_v49, %v4722_v28  ;;  %v540_v52 = vpop.f32.mrb[9].mxu0 }
  0xfa   : > { %v541_v54 = vadd.f32 %v4722_v28, %v540_v52  ;;  %v3815_v55 = vpop.f32.mrb[10].mxu0  ;;  %v4774_v2 = vld [vmem:[#allocation2 + $0x30] sm:$0xff] }
  0xfb   : > { %646 = vst.msk [vmem:[#allocation2 + $0x50] sm:$0xff] %vm635_vm2, %v549_v51  ;;  %v552_v56 = vadd.f32 %v3815_v55, %v4722_v28  ;;  %4283 = vrot.lane.b32.xlu0 %v4277_v47, %s4596_s11  ;;  %4293 = vrot.lane.b32.xlu1 %v4292_v53, %s4597_s12  ;;  %v543_v57 = vpop.f32.mrb[11].mxu0  ;;  %v4816_v31 = vld [vmem:[#allocation2 + $0x20] sm:$0xff] }
  0xfc   : > { %644 = vst.msk [vmem:[#allocation2 + $0x40] sm:$0xff] %vm635_vm2, %v541_v54  ;;  %v544_v59 = vadd.f32 %v4722_v28, %v543_v57  ;;  %v4776_v3 = vld [vmem:[#allocation2 + $0x38] sm:$0xff] }
  0xfd   : > { %647 = vst.msk [vmem:[#allocation2 + $0x58] sm:$0xff] %vm635_vm2, %v552_v56  ;;  %v4302_v11 = vpack.i.bf16 %v4776_v3, %v4774_v2  ;;  %v4818_v32 = vld [vmem:[#allocation2 + $0x28] sm:$0xff] }
  0xfe   : > { %645 = vst.msk [vmem:[#allocation2 + $0x48] sm:$0xff] %vm635_vm2, %v544_v59  ;;  %v4317_v35 = vpack.i.bf16 %v4818_v32, %v4816_v31 }
  0xff   : > { %4288 = vrot.lane.b32.xlu0 %v4292_v53, %s4594_s9 }
 0x100   : > { %v3818_v60 = vpop.f32.mrb[12].mxu0 }
 0x101   : > { %v565_v61 = vadd.f32 %v3818_v60, %v4722_v28  ;;  %v556_v62 = vpop.f32.mrb[13].mxu0 }
 0x102   : > { %v557_v63 = vadd.f32 %v4722_v28, %v556_v62  ;;  %v3819_v0 = vpop.f32.mrb[14].mxu0  ;;  %v4772_v1 = vld [vmem:[#allocation2 + $0x50] sm:$0xff] }
 0x103   : > { %650 = vst.msk [vmem:[#allocation2 + $0x70] sm:$0xff] %vm635_vm2, %v565_v61  ;;  %v568_v4 = vadd.f32 %v3819_v0, %v4722_v28  ;;  %4298 = vrot.lane.b32.xlu0 %v4292_v53, %s4596_s11  ;;  %v559_v5 = vpop.f32.mrb[15].mxu0 }
 0x104   : > { %648 = vst.msk [vmem:[#allocation2 + $0x60] sm:$0xff] %vm635_vm2, %v557_v63  ;;  %v560_v6 = vadd.f32 %v4722_v28, %v559_v5  ;;  %v4783_v7 = vld [vmem:[#allocation2 + $0x58] sm:$0xff] }
 0x105   : > { %651 = vst.msk [vmem:[#allocation2 + $0x78] sm:$0xff] %vm635_vm2, %v568_v4  ;;  %v4788_v8 = vpack.i.bf16 %v4783_v7, %v4772_v1 }
 0x106   : > { %649 = vst.msk [vmem:[#allocation2 + $0x68] sm:$0xff] %vm635_vm2, %v560_v6 }
 0x107   : > { %4352 = vrot.lane.b32.xlu1 %v4788_v8, %s4595_s10  ;;  %4303 = vrot.lane.b32.xlu0 %v4302_v11, %s4595_s10 }
 0x108   : > { %v3822_v15 = vpop.f32.mrb[16].mxu0 }
 0x109   : > { %v581_v16 = vadd.f32 %v3822_v15, %v4722_v28  ;;  %v572_v17 = vpop.f32.mrb[17].mxu0 }
 0x10a   : > { %v573_v18 = vadd.f32 %v4722_v28, %v572_v17  ;;  %v3823_v19 = vpop.f32.mrb[18].mxu0  ;;  %v4798_v20 = vld [vmem:[#allocation2 + $0x70] sm:$0xff] }
 0x10b   : > { %654 = vst.msk [vmem:[#allocation2 + $0x90] sm:$0xff] %vm635_vm2, %v581_v16  ;;  %v584_v21 = vadd.f32 %v3823_v19, %v4722_v28  ;;  %4308 = vrot.lane.b32.xlu0 %v4302_v11, %s4594_s9  ;;  %v575_v22 = vpop.f32.mrb[19].mxu0  ;;  %v4806_v24 = vld [vmem:[#allocation2 + $0x60] sm:$0xff]  ;;  %v4887_v19 = vld [vmem:[%s4673_s6 + $0x18] sm:$0xff]  }
 0x10c   : > { %652 = vst.msk [vmem:[#allocation2 + $0x80] sm:$0xff] %vm635_vm2, %v573_v18  ;;  %v4804_v23 = vld [vmem:[#allocation2 + $0x78] sm:$0xff]  ;;  %v576_v25 = vadd.f32 %v4722_v28, %v575_v22  ;;  %v4884_v18 = vld [vmem:[%s4673_s6 + $0x10] sm:$0xff]  }
 0x10d   : > { %655 = vst.msk [vmem:[#allocation2 + $0x98] sm:$0xff] %vm635_vm2, %v584_v21  ;;  %v4812_v29 = vpack.i.bf16 %v4804_v23, %v4798_v20  ;;  %v4814_v30 = vld [vmem:[#allocation2 + $0x68] sm:$0xff]  ;;  %v5406_v21 = vunpack.c.l.bf16 %v4887_v19 }
 0x10e   : > { %653 = vst.msk [vmem:[#allocation2 + $0x88] sm:$0xff] %vm635_vm2, %v576_v25  ;;  %v4826_v33 = vpack.i.bf16 %v4814_v30, %v4806_v24 }
 0x10f   : > { %4387 = vrot.lane.b32.xlu1 %v4812_v29, %s4594_s9  ;;  %4313 = vrot.lane.b32.xlu0 %v4302_v11, %s4596_s11 }
 0x110   : > { %v3826_v34 = vpop.f32.mrb[20].mxu0 }
 0x111   : > { %v597_v36 = vadd.f32 %v3826_v34, %v4722_v28  ;;  %v588_v37 = vpop.f32.mrb[21].mxu0  ;;  %v5407_v34 = vunpack.c.h.bf16 %v4884_v18 }
 0x112   : > { %v4831_v38 = vld [vmem:[#allocation2 + $0x90] sm:$0xff]  ;;  %v589_v39 = vadd.f32 %v4722_v28, %v588_v37  ;;  %v3827_v40 = vpop.f32.mrb[22].mxu0 }
 0x113   : > { %4402 = vrot.lane.b32.xlu1 %v4826_v33, %s4596_s11  ;;  %4318 = vrot.lane.b32.xlu0 %v4317_v35, %s4594_s9  ;;  %658 = vst.msk [vmem:[#allocation2 + $0xb0] sm:$0xff] %vm635_vm2, %v597_v36  ;;  %v600_v41 = vadd.f32 %v3827_v40, %v4722_v28  ;;  %v591_v42 = vpop.f32.mrb[23].mxu0  ;;  %v4855_v57 = vld [vmem:[#allocation2 + $0x80] sm:$0xff] }
 0x114   : > { %v4839_v43 = vld [vmem:[#allocation2 + $0x98] sm:$0xff]  ;;  %656 = vst.msk [vmem:[#allocation2 + $0xa0] sm:$0xff] %vm635_vm2, %v589_v39  ;;  %v592_v46 = vadd.f32 %v4722_v28, %v591_v42 }
 0x115   : > { %v4406_v47 = vpack.i.bf16 %v4839_v43, %v4831_v38  ;;  %659 = vst.msk [vmem:[#allocation2 + $0xb8] sm:$0xff] %vm635_vm2, %v600_v41  ;;  %v4857_v58 = vld [vmem:[#allocation2 + $0x88] sm:$0xff] }
 0x116   : > { %657 = vst.msk [vmem:[#allocation2 + $0xa8] sm:$0xff] %vm635_vm2, %v592_v46  ;;  %v4421_v60 = vpack.i.bf16 %v4857_v58, %v4855_v57 }
 0x117   : > { %4407 = vrot.lane.b32.xlu1 %v4406_v47, %s4596_s11  ;;  %4323 = vrot.lane.b32.xlu0 %v4317_v35, %s4597_s12 }
 0x118   : > { %v3830_v49 = vpop.f32.mrb[24].mxu0 }
 0x119   : > { %v613_v51 = vadd.f32 %v3830_v49, %v4722_v28  ;;  %v604_v52 = vpop.f32.mrb[25].mxu0 }
 0x11a   : > { %v605_v53 = vadd.f32 %v4722_v28, %v604_v52  ;;  %v3831_v54 = vpop.f32.mrb[26].mxu0  ;;  %v4876_v15 = vld [vmem:[#allocation2 + $0xb0] sm:$0xff] }
 0x11b   : > { %4412 = vrot.lane.b32.xlu1 %v4406_v47, %s4595_s10  ;;  %4328 = vrot.lane.b32.xlu0 %v4317_v35, %s4596_s11  ;;  %662 = vst.msk [vmem:[#allocation2 + $0xd0] sm:$0xff] %vm635_vm2, %v613_v51  ;;  %v616_v55 = vadd.f32 %v3831_v54, %v4722_v28  ;;  %v607_v56 = vpop.f32.mrb[27].mxu0  ;;  %v4893_v22 = vld [vmem:[#allocation2 + $0xa0] sm:$0xff]  ;;  %v5405_v35 = vunpack.c.h.bf16 %v4887_v19 }
 0x11c   : > { %660 = vst.msk [vmem:[#allocation2 + $0xc0] sm:$0xff] %vm635_vm2, %v605_v53  ;;  %v608_v59 = vadd.f32 %v4722_v28, %v607_v56  ;;  %v4878_v16 = vld [vmem:[#allocation2 + $0xb8] sm:$0xff] }
 0x11d   : > { %663 = vst.msk [vmem:[#allocation2 + $0xd8] sm:$0xff] %vm635_vm2, %v616_v55  ;;  %v4436_v17 = vpack.i.bf16 %v4878_v16, %v4876_v15  ;;  %v4895_v25 = vld [vmem:[#allocation2 + $0xa8] sm:$0xff]  ;;  %v4334_v39 = vpack.i.bf16 %v5405_v35, %v5407_v34 }
 0x11e   : > { %661 = vst.msk [vmem:[#allocation2 + $0xc8] sm:$0xff] %vm635_vm2, %v608_v59  ;;  %v4906_v37 = vpack.i.bf16 %v4895_v25, %v4893_v22  ;;  %v4956_v59 = vld [vmem:[#allocation2 + $0x40] sm:$0xff] }
 0x11f   : > { %4417 = vrot.lane.b32.xlu1 %v4406_v47, %s4594_s9 }
 0x120   : > { %v3834_v61 = vpop.f32.mrb[28].mxu0 }
 0x121   : > { %v629_v62 = vadd.f32 %v3834_v61, %v4722_v28  ;;  %v620_v63 = vpop.f32.mrb[29].mxu0 }
 0x122   : > { %v621_v0 = vadd.f32 %v4722_v28, %v620_v63  ;;  %v3835_v4 = vpop.f32.mrb[30].mxu0  ;;  %v4914_v40 = vld [vmem:[#allocation2 + $0xd0] sm:$0xff] }
 0x123   : > { %4422 = vrot.lane.b32.xlu1 %v4421_v60, %s4596_s11  ;;  %666 = vst.msk [vmem:[#allocation2 + $0xf0] sm:$0xff] %vm635_vm2, %v629_v62  ;;  %v632_v5 = vadd.f32 %v3835_v4, %v4722_v28  ;;  %v623_v6 = vpop.f32.mrb[31].mxu0  ;;  %v4924_v46 = vld [vmem:[#allocation2 + $0xc0] sm:$0xff]  ;;  %v4969_v4 = vld [vmem:[%s4673_s6 + $0x28] sm:$0xff]  }
 0x124   : > { %664 = vst.msk [vmem:[#allocation2 + $0xe0] sm:$0xff] %vm635_vm2, %v621_v0  ;;  %v624_v11 = vadd.f32 %v4722_v28, %v623_v6  ;;  %v5408_v28 = vunpack.c.l.bf16 %v4884_v18  ;;  %v4916_v41 = vld [vmem:[#allocation2 + $0xd8] sm:$0xff]  ;;  %v4966_v0 = vld [vmem:[%s4673_s6 + $0x20] sm:$0xff]  }
 0x125   : > { %667 = vst.msk [vmem:[#allocation2 + $0xf8] sm:$0xff] %vm635_vm2, %v632_v5  ;;  %5414 = vst [vmem:[#allocation3_spill] sm:$0xff] %v4916_v41  ;;  %v4922_v42 = vpack.i.bf16 %v4916_v41, %v4914_v40  ;;  %v4926_v47 = vld [vmem:[#allocation2 + $0xc8] sm:$0xff] }
 0x126   : > { %665 = vst.msk [vmem:[#allocation2 + $0xe8] sm:$0xff] %vm635_vm2, %v624_v11  ;;  %v4332_v36 = vpack.i.bf16 %v5406_v21, %v5408_v28  ;;  %v4932_v49 = vpack.i.bf16 %v4926_v47, %v4924_v46 }
 0x127   : > { %4427 = vrot.lane.b32.xlu1 %v4421_v60, %s4594_s9 }
 0x12a   : > { %v4934_v51 = vld [vmem:[#allocation2 + $0xf0] sm:$0xff] }
 0x12b   : > { %4432 = vrot.lane.b32.xlu1 %v4421_v60, %s4597_s12  ;;  %v4944_v54 = vld [vmem:[#allocation2 + $0xe0] sm:$0xff]  ;;  %v4958_v60 = vld [vmem:[#allocation2 + $0x48] sm:$0xff] }
 0x12c   : > { %v4936_v52 = vld [vmem:[#allocation2 + $0xf8] sm:$0xff]  ;;  %v4356_v61 = vpack.i.bf16 %v4958_v60, %v4956_v59 }
 0x12d   : > { %v4942_v53 = vpack.i.bf16 %v4936_v52, %v4934_v51  ;;  %v4946_v55 = vld [vmem:[#allocation2 + $0xe8] sm:$0xff] }
 0x12e   : > { %v4952_v56 = vpack.i.bf16 %v4946_v55, %v4944_v54 }
 0x12f   : > { %4437 = vrot.lane.b32.xlu1 %v4436_v17, %s4596_s11 }
 0x133   : > { %4442 = vrot.lane.b32.xlu1 %v4436_v17, %s4595_s10 }
 0x137   : > { %4447 = vrot.lane.b32.xlu1 %v4436_v17, %s4594_s9  ;;  %v5412_v17 = vunpack.c.l.bf16 %v4966_v0 }
 0x139   : > { %4333 = vxpose.xlu0.b32.start [1/2] (short) (narrow) %v4332_v36, 16  ;;  %v5411_v36 = vunpack.c.l.bf16 %v4969_v4 }
 0x13b   : > { %4452 = vrot.lane.b32.xlu1 %v4906_v37, %s4596_s11 }
 0x13d   : > { %4335 = vxpose.xlu0.b32.end [2/2] (short) (narrow) %v4334_v39, 16 }
 0x13f   : > { %4462 = vrot.lane.b32.xlu1 %v4906_v37, %s4597_s12 }
 0x143   : > { %4467 = vrot.lane.b32.xlu1 %v4922_v42, %s4596_s11 }
 0x147   : > { %4472 = vrot.lane.b32.xlu1 %v4932_v49, %s4596_s11 }
 0x14b   : > { %4477 = vrot.lane.b32.xlu1 %v4942_v53, %s4596_s11 }
 0x14f   : > { %4482 = vrot.lane.b32.xlu1 %v4952_v56, %s4596_s11 }
 0x166   : > { %4347 = vrot.lane.b32.xlu0 %v4788_v8, %s4596_s11 }
 0x169   : > { %v4274_v62 = vpop.permute.xlu0 %4273  ;;  %v4279_v35 = vpop.permute.xlu1 %4278 }
 0x16a   : > { %4357 = vrot.lane.b32.xlu0 %v4356_v61, %s4596_s11  ;;  %v4276_v21 = vunpack.i.h.bf16 %v4274_v62  ;;  %v4275_v34 = vunpack.i.l.bf16 %v4274_v62 }
 0x16c   : > { %v683_v12 = vsel %vm682_vm4, %v4750_v50, %v4275_v34 }
 0x16d   : > { %v4284_v63 = vpop.permute.xlu0 %4283  ;;  %v4294_v28 = vpop.permute.xlu1 %4293 }
 0x16e   : > { %v4286_v5 = vunpack.i.h.bf16 %v4284_v63  ;;  %v4285_v6 = vunpack.i.l.bf16 %v4284_v63  ;;  %4362 = vrot.lane.b32.xlu0 %v4788_v8, %s4594_s9  ;;  %v4486_v8 = vpack.i.bf16 %v5411_v36, %v5412_v17  ;;  %v684_v63 = vsel %vm682_vm4, %v4746_v48, %v4276_v21  ;;  %v5006_v21 = vld [vmem:[%s5401_s2] sm:$0xff] }
 0x16f   : > { %v5415_v17 = vunpack.c.h.bf16 %v4966_v0  ;;  %v4296_v50 = vunpack.i.h.bf16 %v4294_v28  ;;  %v4295_v34 = vunpack.i.l.bf16 %v4294_v28 }
 0x170   : > { %v4068_v11 = vpack.c.bf16 %v4286_v5, %v4285_v6 }
 0x171   : > { %v4289_v39 = vpop.permute.xlu0 %4288 }
 0x172   : > { %4069 = vmatprep.subr.bf16.mxu0 %v4068_v11  ;;  %4367 = vrot.lane.b32.xlu0 %v4356_v61, %s4594_s9  ;;  %v4291_v62 = vunpack.i.h.bf16 %v4289_v39 }
 0x173   : > { %4071 = vmatpush3.bf16.msra.mxu0 %v4068_v11  ;;  %v4290_v11 = vunpack.i.l.bf16 %v4289_v39  ;;  %v4280_v39 = vunpack.i.l.bf16 %v4279_v35 }
 0x174   : > { %v694_v48 = vsel %vm682_vm4, %v4291_v62, %v4739_v45 }
 0x175   : > { %v4299_v5 = vpop.permute.xlu0 %4298  ;;  %v707_v45 = vsel %vm682_vm4, %v4295_v34, %v4280_v39 }
 0x176   : > { %v4301_v6 = vunpack.i.h.bf16 %v4299_v5  ;;  %v4300_v14 = vunpack.i.l.bf16 %v4299_v5  ;;  %4372 = vrot.lane.b32.xlu0 %v4356_v61, %s4597_s12  ;;  %3841 = vmatmul.mubr.msk.f32.vlgmr.msra.gmra.mrb[32].mxu0 %vm719_vm3, %v3621_v13  ;;  %v5416_v5 = vunpack.c.h.bf16 %v4969_v4  ;;  %v4076_v13 = vpack.c.bf16 %v684_v63, %v683_v12 }
 0x178   : > { %4487 = vxpose.xlu1.b32.start [1/2] (short) (narrow) %v4486_v8, 16  ;;  %v4072_v36 = vpack.c.bf16 %v4301_v6, %v4300_v14  ;;  %v4488_v61 = vpack.i.bf16 %v5416_v5, %v5415_v17  ;;  %v693_v14 = vsel %vm682_vm4, %v4290_v11, %v4737_v44  ;;  %v4281_v17 = vunpack.i.h.bf16 %v4279_v35 }
 0x179   : > { %v4994_v41 = vpop.permute.xlu0 %4303  ;;  %v5008_v12 = vpop.permute.xlu1 %4352  ;;  %v4080_v44 = vpack.c.bf16 %v694_v48, %v693_v14 }
 0x17a   : > { %4377 = vrot.lane.b32.xlu0 %v4812_v29, %s4596_s11  ;;  %4073 = vmatprep.subr.bf16.mxu1 %v4072_v36  ;;  %v4306_v39 = vunpack.i.h.bf16 %v4994_v41 }
 0x17b   : > { %4075 = vmatpush3.bf16.msra.mxu1 %v4072_v36  ;;  %v708_v36 = vsel %vm682_vm4, %v4296_v50, %v4281_v17 }
 0x17c   : > { %4489 = vxpose.xlu1.b32.end [2/2] (short) (narrow) %v4488_v61, 16  ;;  %4077 = vmatprep.subr.bf16.mxu1 %v4076_v13 }
 0x17d   : > { %v5010_v28 = vpop.permute.xlu0 %4308 }
 0x17e   : > { %4382 = vrot.lane.b32.xlu0 %v4812_v29, %s4595_s10  ;;  %3848 = vmatmul.mubr.msk.f32.vlgmr.msra.gmra.mrb[0].mxu1 %vm719_vm3, %v4268_v9  ;;  %v4084_v29 = vpack.c.bf16 %v708_v36, %v707_v45  ;;  %v5417_v45 = vunpack.c.l.bf16 %v4681_v10 }
 0x17f   : > { %4079 = vmatpush3.bf16.msra.mxu1 %v4076_v13  ;;  %3862 = vmatprep.mubr.msk.f32.mxu1 %vm930_vm5, %v5006_v21  ;;  %v5028_v13 = vld [vmem:[%s5401_s2 + $0x8] sm:$0xff] }
 0x180   : > { %4081 = vmatprep.subr.bf16.mxu1 %v4080_v44 }
 0x181   : > { %v5019_v35 = vpop.permute.xlu1 %4387  ;;  %v4314_v63 = vpop.permute.xlu0 %4313 }
 0x182   : > { %v4316_v8 = vunpack.i.h.bf16 %v4314_v63  ;;  %v4315_v6 = vunpack.i.l.bf16 %v4314_v63  ;;  %4392 = vrot.lane.b32.xlu0 %v4826_v33, %s4594_s9 }
 0x183   : > { %4083 = vmatpush3.bf16.msra.mxu1 %v4080_v44  ;;  %v4305_v44 = vunpack.i.l.bf16 %v4994_v41 }
 0x184   : > { %4085 = vmatprep.subr.bf16.mxu1 %v4084_v29  ;;  %v4088_v5 = vpack.c.bf16 %v4316_v8, %v4315_v6  ;;  %v5418_v6 = vunpack.c.h.bf16 %v4681_v10 }
 0x185   : > { %v4403_v62 = vpop.permute.xlu1 %4402  ;;  %v4319_v11 = vpop.permute.xlu0 %4318 }
 0x186   : > { %v4405_v61 = vunpack.i.h.bf16 %v4403_v62  ;;  %v4404_v9 = vunpack.i.l.bf16 %v4403_v62  ;;  %4397 = vrot.lane.b32.xlu0 %v4826_v33, %s4597_s12  ;;  %v4266_v33 = vunpack.i.h.bf16 %v4715_v26  ;;  %v4321_v26 = vunpack.i.h.bf16 %v4319_v11 }
 0x187   : > { %4087 = vmatpush3.bf16.msra.mxu1 %v4084_v29  ;;  %v4320_v41 = vunpack.i.l.bf16 %v4319_v11  ;;  %v1027_v29 = vsel %vm682_vm4, %v4816_v31, %v4305_v44  ;;  %v1028_v62 = vsel %vm682_vm4, %v4818_v32, %v4306_v39  ;;  %v4311_v32 = vunpack.i.h.bf16 %v5010_v28 }
 0x188   : > { %v4132_v50 = vpack.c.bf16 %v4405_v61, %v4404_v9  ;;  %4089 = vmatprep.subr.bf16.mxu1 %v4088_v5  ;;  %v4271_v61 = vunpack.i.h.bf16 %v4717_v27  ;;  %v4096_v9 = vpack.c.bf16 %v1028_v62, %v1027_v29  ;;  %v1038_v31 = vsel %vm682_vm4, %v4321_v26, %v4776_v3  ;;  %v5066_v3 = vld [vmem:[%s4673_s6 + $0x30] sm:$0xff]  }
 0x189   : > { %v4408_v34 = vpop.permute.xlu1 %4407  ;;  %v4324_v14 = vpop.permute.xlu0 %4323  ;;  %v4310_v11 = vunpack.i.l.bf16 %v5010_v28  ;;  %v5069_v28 = vld [vmem:[%s4673_s6 + $0x38] sm:$0xff]   ;;  %v5419_v39 = vunpack.c.l.bf16 %v4884_v18  ;;  %v3645_v44 = vunpack.c.h.bf16 %v5066_v3 }
 0x18a   : > { %v4410_v48 = vunpack.i.h.bf16 %v4408_v34  ;;  %v4409_v17 = vunpack.i.l.bf16 %v4408_v34  ;;  %4457 = vrot.lane.b32.xlu0 %v4906_v37, %s4594_s9  ;;  %3863 = vmatmul.mubr.msk.f32.vlgmr.msra.gmra.mrb[2].mxu1 %vm930_vm5, %v5028_v13  ;;  %v4326_v10 = vunpack.i.h.bf16 %v4324_v14  ;;  %v1037_v34 = vsel %vm682_vm4, %v4320_v41, %v4774_v2 }
 0x18b   : > { %4091 = vmatpush3.bf16.msra.mxu1 %v4088_v5  ;;  %3869 = vmatprep.mubr.msk.f32.mxu1 %vm719_vm3, %v5417_v45  ;;  %v4100_v27 = vpack.c.bf16 %v1038_v31, %v1037_v34  ;;  %v3649_v45 = vunpack.c.h.bf16 %v5069_v28 }
 0x18c   : > { %v5040_v36 = vpack.c.bf16 %v4410_v48, %v4409_v17  ;;  %4133 = vmatprep.subr.bf16.mxu0 %v4132_v50  ;;  %v1052_v48 = vsel %vm682_vm4, %v4326_v10, %v4311_v32  ;;  %v3644_v17 = vunpack.c.l.bf16 %v5066_v3 }
 0x18d   : > { %v4329_v63 = vpop.permute.xlu0 %4328  ;;  %4135 = vmatpush3.bf16.msra.mxu0 %v4132_v50  ;;  %v4325_v50 = vunpack.i.l.bf16 %v4324_v14 }
 0x18e   : > { %v4331_v37 = vunpack.i.h.bf16 %v4329_v63  ;;  %v4330_v8 = vunpack.i.l.bf16 %v4329_v63  ;;  %3870 = vmatmul.mubr.msk.f32.vlgmr.msra.gmra.mrb[4].mxu1 %vm719_vm3, %v5418_v6  ;;  %4149 = vmatprep.subr.bf16.mxu0 %v5040_v36 }
 0x18f   : > { %3876 = vmatprep.mubr.msk.f32.mxu1 %vm719_vm3, %v4266_v33  ;;  %v1051_v14 = vsel %vm682_vm4, %v4325_v50, %v4310_v11  ;;  %v3648_v33 = vunpack.c.l.bf16 %v5069_v28 }
 0x190   : > { %v4092_v5 = vpack.c.bf16 %v4331_v37, %v4330_v8  ;;  %v4104_v2 = vpack.c.bf16 %v1052_v48, %v1051_v14  ;;  %v4502_v37 = vpack.i.bf16 %v3649_v45, %v3645_v44  ;;  %v4413_v8 = vpop.permute.xlu1 %4412  ;;  %v5421_v14 = vunpack.c.h.bf16 %v4966_v0 }
 0x191   : > { %v4500_v63 = vpack.i.bf16 %v3648_v33, %v3644_v17  ;;  %v4414_v10 = vunpack.i.l.bf16 %v4413_v8 }
 0x192   : > { %4093 = vmatprep.subr.bf16.mxu1 %v4092_v5 }
 0x193   : > { %4095 = vmatpush3.bf16.msra.mxu1 %v4092_v5  ;;  %v2041_v32 = vsel %vm682_vm4, %v4855_v57, %v4414_v10 }
 0x194   : > { %4097 = vmatprep.subr.bf16.mxu1 %v4096_v9  ;;  %v5096_v6 = vpop.permute.xlu1 %4417 }
 0x196   : > { %3877 = vmatmul.mubr.msk.f32.vlgmr.msra.gmra.mrb[6].mxu1 %vm719_vm3, %v4271_v61 }
 0x197   : > { %4099 = vmatpush3.bf16.msra.mxu1 %v4096_v9  ;;  %3891 = vmatprep.mubr.msk.f32.mxu1 %vm930_vm5, %v5006_v21  ;;  %v4415_v9 = vunpack.i.h.bf16 %v4413_v8  ;;  %v4354_v8 = vunpack.i.l.bf16 %v5008_v12 }
 0x198   : > { %4101 = vmatprep.subr.bf16.mxu1 %v4100_v27  ;;  %v4423_v26 = vpop.permute.xlu1 %4422 }
 0x199   : > { %v4425_v62 = vunpack.i.h.bf16 %v4423_v26  ;;  %v4424_v5 = vunpack.i.l.bf16 %v4423_v26  ;;  %v2042_v11 = vsel %vm682_vm4, %v4857_v58, %v4415_v9  ;;  %v1365_v10 = vsel %vm682_vm4, %v4956_v59, %v4354_v8 }
 0x19a   : > { %4520 = vrot.lane.b32.xlu1 %v4942_v53, %s4595_s10  ;;  %v5115_v48 = vpack.c.bf16 %v2042_v11, %v2041_v32 }
 0x19b   : > { %4103 = vmatpush3.bf16.msra.mxu1 %v4100_v27  ;;  %v4152_v31 = vpack.c.bf16 %v4425_v62, %v4424_v5 }
 0x19c   : > { %4105 = vmatprep.subr.bf16.mxu1 %v4104_v2  ;;  %v5098_v61 = vpop.permute.xlu1 %4427 }
 0x19e   : > { %4525 = vrot.lane.b32.xlu1 %v4932_v49, %s4594_s9 }
 0x19f   : > { %4107 = vmatpush3.bf16.msra.mxu1 %v4104_v2 }
 0x1a0   : > { %v5110_v27 = vpop.permute.xlu1 %4432 }
 0x1a2   : > { %4535 = vrot.lane.b32.xlu1 %v4922_v42, %s4594_s9  ;;  %3892 = vmatmul.mubr.msk.f32.vlgmr.msra.gmra.mrb[8].mxu1 %vm930_vm5, %v5028_v13 }
 0x1a3   : > { %3898 = vmatprep.mubr.msk.f32.mxu1 %vm719_vm3, %v5419_v39 }
 0x1a6   : > { %4540 = vrot.lane.b32.xlu1 %v4952_v56, %s4594_s9 }
 0x1a8   : > { %4501 = vxpose.xlu0.b32.start [1/2] (short) (narrow) %v4500_v63, 16 }
 0x1aa   : > { %4550 = vrot.lane.b32.xlu1 %v4942_v53, %s4594_s9  ;;  %v5420_v53 = vunpack.c.l.bf16 %v4966_v0 }
 0x1ac   : > { %4503 = vxpose.xlu0.b32.end [2/2] (short) (narrow) %v4502_v37, 16  ;;  %v4355_v37 = vunpack.i.h.bf16 %v5008_v12 }
 0x1b9   : > { %v4336_v41 = vpop.trf.xlu0 }
 0x1ba   : > { %v4340_v29 = vunpack.i.h.bf16 %v4336_v41 }
 0x1bc   : > { %3934 = vmatprep.mubr.msk.f32.mxu0 %vm719_vm3, %v4340_v29 }
 0x1bd   : > { %v4341_v50 = vpop.trf.xlu0 }
 0x1be   : > { %v4345_v34 = vunpack.i.h.bf16 %v4341_v50 }
 0x1c0   : > { %3935 = vmatmul.mubr.msk.f32.vlgmr.msra.gmra.mrb[34].mxu0 %vm719_vm3, %v4345_v34 }
 0x1c1   : > { %4151 = vmatpush3.bf16.msra.mxu0 %v5040_v36  ;;  %3956 = vmatprep.mubr.msk.f32.mxu0 %vm719_vm3, %v5420_v53  ;;  %v5118_v36 = vpop.permute.xlu1 %4437  ;;  %v5422_v53 = vunpack.c.h.bf16 %v4884_v18 }
 0x1c2   : > { %4153 = vmatprep.subr.bf16.mxu0 %v4152_v31 }
 0x1c4   : > { %3957 = vmatmul.mubr.msk.f32.vlgmr.msra.gmra.mrb[36].mxu0 %vm719_vm3, %v5421_v14 }
 0x1c5   : > { %4155 = vmatpush3.bf16.msra.mxu0 %v4152_v31  ;;  %v5120_v2 = vpop.permute.xlu1 %4442  ;;  %v4342_v31 = vunpack.i.l.bf16 %v4341_v50 }
 0x1c6   : > { %4157 = vmatprep.subr.bf16.mxu0 %v5115_v48 }
 0x1c9   : > { %v5122_v57 = vpop.permute.xlu1 %4447 }
 0x1cd   : > { %v5126_v58 = vpop.permute.xlu1 %4452 }
 0x1d1   : > { %v5134_v9 = vpop.permute.xlu1 %4462 }
 0x1d5   : > { %4515 = vrot.lane.b32.xlu0 %v4922_v42, %s4595_s10  ;;  %v4337_v42 = vunpack.i.l.bf16 %v4336_v41  ;;  %v5143_v32 = vpop.permute.xlu1 %4467 }
 0x1d8   : > { %v4348_v39 = vpop.permute.xlu0 %4347 }
 0x1d9   : > { %v4350_v0 = vunpack.i.h.bf16 %v4348_v39  ;;  %v4349_v63 = vunpack.i.l.bf16 %v4348_v39  ;;  %4530 = vrot.lane.b32.xlu0 %v4932_v49, %s4597_s12  ;;  %v1366_v49 = vsel %vm682_vm4, %v4958_v60, %v4355_v37  ;;  %v5153_v50 = vpop.permute.xlu1 %4472 }
 0x1db   : > { %v4108_v26 = vpack.c.bf16 %v4350_v0, %v4349_v63 }
 0x1dc   : > { %v4358_v29 = vpop.permute.xlu0 %4357 }
 0x1dd   : > { %v4360_v62 = vunpack.i.h.bf16 %v4358_v29  ;;  %v4359_v5 = vunpack.i.l.bf16 %v4358_v29  ;;  %4545 = vrot.lane.b32.xlu0 %v4952_v56, %s4597_s12  ;;  %4109 = vmatprep.subr.bf16.mxu1 %v4108_v26  ;;  %v4116_v56 = vpack.c.bf16 %v1366_v49, %v1365_v10  ;;  %v5157_v10 = vpop.permute.xlu1 %4477 }
 0x1de   : > { %4111 = vmatpush3.bf16.msra.mxu1 %v4108_v26 }
 0x1df   : > { %v4112_v34 = vpack.c.bf16 %v4360_v62, %v4359_v5 }
 0x1e0   : > { %v4363_v12 = vpop.permute.xlu0 %4362 }
 0x1e1   : > { %4113 = vmatprep.subr.bf16.mxu1 %v4112_v34  ;;  %3899 = vmatmul.mubr.msk.f32.vlgmr.msra.gmra.mrb[10].mxu1 %vm719_vm3, %v5422_v53  ;;  %v4365_v0 = vunpack.i.h.bf16 %v4363_v12  ;;  %v4364_v63 = vunpack.i.l.bf16 %v4363_v12 }
 0x1e2   : > { %4115 = vmatpush3.bf16.msra.mxu1 %v4112_v34  ;;  %3905 = vmatprep.mubr.msk.f32.mxu1 %vm719_vm3, %v4337_v42 }
 0x1e3   : > { %4117 = vmatprep.subr.bf16.mxu1 %v4116_v56 }
 0x1e4   : > { %v4368_v41 = vpop.permute.xlu0 %4367 }
 0x1e5   : > { %v4370_v59 = vunpack.i.h.bf16 %v4368_v41  ;;  %v4369_v11 = vunpack.i.l.bf16 %v4368_v41  ;;  %3906 = vmatmul.mubr.msk.f32.vlgmr.msra.gmra.mrb[12].mxu1 %vm719_vm3, %v4342_v31  ;;  %v5423_v31 = vunpack.c.l.bf16 %v4887_v19  ;;  %v5168_v41 = vpop.permute.xlu1 %4482 }
 0x1e6   : > { %4119 = vmatpush3.bf16.msra.mxu1 %v4116_v56  ;;  %3920 = vmatprep.mubr.msk.f32.mxu1 %vm930_vm5, %v5006_v21 }
 0x1e7   : > { %v1375_v18 = vsel %vm682_vm4, %v4369_v11, %v4772_v1  ;;  %v1376_v60 = vsel %vm682_vm4, %v4370_v59, %v4783_v7 }
 0x1e8   : > { %v4373_v14 = vpop.permute.xlu0 %4372  ;;  %v4120_v39 = vpack.c.bf16 %v1376_v60, %v1375_v18 }
 0x1e9   : > { %v4375_v37 = vunpack.i.h.bf16 %v4373_v14  ;;  %v4374_v8 = vunpack.i.l.bf16 %v4373_v14  ;;  %v5424_v14 = vunpack.c.h.bf16 %v4887_v19 }
 0x1ea   : > { %4121 = vmatprep.subr.bf16.mxu1 %v4120_v39 }
 0x1eb   : > { %4123 = vmatpush3.bf16.msra.mxu1 %v4120_v39  ;;  %v1389_v26 = vsel %vm682_vm4, %v4374_v8, %v4364_v63  ;;  %v1390_v29 = vsel %vm682_vm4, %v4375_v37, %v4365_v0  ;;  %v4430_v39 = vunpack.i.h.bf16 %v5098_v61  ;;  %v4429_v0 = vunpack.i.l.bf16 %v5098_v61 }
 0x1ec   : > { %v4378_v62 = vpop.permute.xlu0 %4377  ;;  %v4124_v5 = vpack.c.bf16 %v1390_v29, %v1389_v26  ;;  %v4390_v63 = vunpack.i.h.bf16 %v5019_v35  ;;  %v4389_v26 = vunpack.i.l.bf16 %v5019_v35  ;;  %v4420_v29 = vunpack.i.h.bf16 %v5096_v6 }
 0x1ed   : > { %v4380_v1 = vunpack.i.h.bf16 %v4378_v62  ;;  %v4379_v42 = vunpack.i.l.bf16 %v4378_v62  ;;  %v2052_v35 = vsel %vm682_vm4, %v4430_v39, %v4839_v43  ;;  %v4454_v43 = vunpack.i.l.bf16 %v5126_v58 }
 0x1ee   : > { %4125 = vmatprep.subr.bf16.mxu1 %v4124_v5 }
 0x1ef   : > { %v4128_v7 = vpack.c.bf16 %v4380_v1, %v4379_v42  ;;  %4127 = vmatpush3.bf16.msra.mxu1 %v4124_v5  ;;  %v4434_v1 = vunpack.i.l.bf16 %v5110_v27  ;;  %v2051_v42 = vsel %vm682_vm4, %v4429_v0, %v4831_v38 }
 0x1f0   : > { %v4383_v49 = vpop.permute.xlu0 %4382 }
 0x1f1   : > { %v4385_v34 = vunpack.i.h.bf16 %v4383_v49  ;;  %v4384_v12 = vunpack.i.l.bf16 %v4383_v49  ;;  %4129 = vmatprep.subr.bf16.mxu1 %v4128_v7 }
 0x1f2   : > { %3921 = vmatmul.mubr.msk.f32.vlgmr.msra.gmra.mrb[14].mxu1 %vm930_vm5, %v5028_v13 }
 0x1f3   : > { %4131 = vmatpush3.bf16.msra.mxu1 %v4128_v7  ;;  %3927 = vmatprep.mubr.msk.f32.mxu1 %vm719_vm3, %v5423_v31  ;;  %v1703_v53 = vsel %vm682_vm4, %v4806_v24, %v4384_v12  ;;  %v1704_v56 = vsel %vm682_vm4, %v4814_v30, %v4385_v34  ;;  %v4440_v7 = vunpack.i.h.bf16 %v5118_v36 }
 0x1f4   : > { %v4393_v59 = vpop.permute.xlu0 %4392  ;;  %v4136_v11 = vpack.c.bf16 %v1704_v56, %v1703_v53  ;;  %v4160_v53 = vpack.c.bf16 %v2052_v35, %v2051_v42 }
 0x1f5   : > { %v4395_v18 = vunpack.i.h.bf16 %v4393_v59  ;;  %v4394_v60 = vunpack.i.l.bf16 %v4393_v59  ;;  %v4455_v59 = vunpack.i.h.bf16 %v5126_v58  ;;  %v4469_v58 = vunpack.i.l.bf16 %v5143_v32 }
 0x1f6   : > { %4137 = vmatprep.subr.bf16.mxu1 %v4136_v11  ;;  %3928 = vmatmul.mubr.msk.f32.vlgmr.msra.gmra.mrb[16].mxu1 %vm719_vm3, %v5424_v14  ;;  %v4470_v14 = vunpack.i.h.bf16 %v5143_v32  ;;  %v5425_v32 = vunpack.c.l.bf16 %v4969_v4 }
 0x1f7   : > { %4139 = vmatpush3.bf16.msra.mxu1 %v4136_v11  ;;  %v1713_v24 = vsel %vm682_vm4, %v4394_v60, %v4798_v20  ;;  %v1714_v30 = vsel %vm682_vm4, %v4395_v18, %v4804_v23  ;;  %3949 = vmatprep.mubr.msk.f32.mxu1 %vm930_vm5, %v5006_v21  ;;  %v4419_v20 = vunpack.i.l.bf16 %v5096_v6  ;;  %v4435_v23 = vunpack.i.h.bf16 %v5110_v27 }
 0x1f8   : > { %v5182_v37 = vpop.trf.xlu1  ;;  %v4398_v19 = vpop.permute.xlu0 %4397  ;;  %v4140_v8 = vpack.c.bf16 %v1714_v30, %v1713_v24  ;;  %v4439_v6 = vunpack.i.l.bf16 %v5118_v36  ;;  %v4445_v11 = vunpack.i.h.bf16 %v5120_v2  ;;  %v4444_v18 = vunpack.i.l.bf16 %v5120_v2 }
 0x1f9   : > { %v4491_v61 = vunpack.i.l.bf16 %v5182_v37  ;;  %v4400_v62 = vunpack.i.h.bf16 %v4398_v19  ;;  %v4399_v5 = vunpack.i.l.bf16 %v4398_v19  ;;  %v2065_v56 = vsel %vm682_vm4, %v4434_v1, %v4419_v20 }
 0x1fa   : > { %4141 = vmatprep.subr.bf16.mxu1 %v4140_v8  ;;  %v4168_v38 = vpack.c.bf16 %v4440_v7, %v4439_v6  ;;  %v2066_v36 = vsel %vm682_vm4, %v4435_v23, %v4420_v29  ;;  %v4172_v0 = vpack.c.bf16 %v4455_v59, %v4454_v43  ;;  %v2379_v2 = vsel %vm682_vm4, %v4893_v22, %v4444_v18 }
 0x1fb   : > { %4143 = vmatpush3.bf16.msra.mxu1 %v4140_v8  ;;  %3963 = vmatprep.mubr.msk.f32.mxu0 %vm719_vm3, %v4491_v61  ;;  %v1727_v34 = vsel %vm682_vm4, %v4399_v5, %v4389_v26  ;;  %v1728_v12 = vsel %vm682_vm4, %v4400_v62, %v4390_v63  ;;  %v4164_v39 = vpack.c.bf16 %v2066_v36, %v2065_v56  ;;  %v4494_v63 = vunpack.i.h.bf16 %v5182_v37 }
 0x1fc   : > { %v4495_v49 = vpop.trf.xlu1  ;;  %v4144_v27 = vpack.c.bf16 %v1728_v12, %v1727_v34  ;;  %v4458_v60 = vpop.permute.xlu0 %4457  ;;  %v2380_v30 = vsel %vm682_vm4, %v4895_v25, %v4445_v11  ;;  %v4188_v19 = vpack.c.bf16 %v4470_v14, %v4469_v58  ;;  %v4475_v8 = vunpack.i.h.bf16 %v5153_v50 }
 0x1fd   : > { %v4496_v31 = vunpack.i.l.bf16 %v4495_v49  ;;  %v4459_v24 = vunpack.i.l.bf16 %v4458_v60  ;;  %v4474_v26 = vunpack.i.l.bf16 %v5153_v50  ;;  %v4450_v61 = vunpack.i.h.bf16 %v5122_v57 }
 0x1fe   : > { %4145 = vmatprep.subr.bf16.mxu1 %v4144_v27  ;;  %v4449_v29 = vunpack.i.l.bf16 %v5122_v57  ;;  %v4499_v22 = vunpack.i.h.bf16 %v4495_v49  ;;  %v5426_v25 = vunpack.c.h.bf16 %v4969_v4  ;;  %v4176_v37 = vpack.c.bf16 %v2380_v30, %v2379_v2 }
 0x1ff   : > { %3964 = vmatmul.mubr.msk.f32.vlgmr.msra.gmra.mrb[38].mxu0 %vm719_vm3, %v4496_v31  ;;  %4147 = vmatpush3.bf16.msra.mxu1 %v4144_v27  ;;  %v4465_v20 = vunpack.i.h.bf16 %v5134_v9  ;;  %v4464_v62 = vunpack.i.l.bf16 %v5134_v9  ;;  %v2389_v50 = vsel %vm682_vm4, %v4459_v24, %v4876_v15  ;;  %v4192_v57 = vpack.c.bf16 %v4475_v8, %v4474_v26 }
 0x200   : > { %4159 = vmatpush3.bf16.msra.mxu0 %v5115_v48  ;;  %4169 = vmatprep.subr.bf16.mxu1 %v4168_v38  ;;  %v4460_v48 = vunpack.i.h.bf16 %v4458_v60  ;;  %v4479_v23 = vunpack.i.l.bf16 %v5157_v10  ;;  %v4485_v7 = vunpack.i.h.bf16 %v5168_v41 }
 0x201   : > { %4161 = vmatprep.subr.bf16.mxu0 %v4160_v53  ;;  %3978 = vmatprep.mubr.msk.f32.mxu0 %vm930_vm5, %v5006_v21  ;;  %v2403_v9 = vsel %vm682_vm4, %v4464_v62, %v4449_v29  ;;  %v2404_v15 = vsel %vm682_vm4, %v4465_v20, %v4450_v61 }
 0x202   : > { %3950 = vmatmul.mubr.msk.f32.vlgmr.msra.gmra.mrb[18].mxu1 %vm930_vm5, %v5028_v13  ;;  %v2390_v5 = vsel %vm682_vm4, %v4460_v48, %v4878_v16  ;;  %v4480_v16 = vunpack.i.h.bf16 %v5157_v10  ;;  %v4184_v1 = vpack.c.bf16 %v2404_v15, %v2403_v9 }
 0x203   : > { %4171 = vmatpush3.bf16.msra.mxu1 %v4168_v38  ;;  %3985 = vmatprep.mubr.msk.f32.mxu1 %vm719_vm3, %v5425_v32  ;;  %v4180_v4 = vpack.c.bf16 %v2390_v5, %v2389_v50 }
 0x204   : > { %4163 = vmatpush3.bf16.msra.mxu0 %v4160_v53  ;;  %4173 = vmatprep.subr.bf16.mxu1 %v4172_v0  ;;  %v4208_v35 = vpack.c.bf16 %v4480_v16, %v4479_v23 }
 0x205   : > { %4165 = vmatprep.subr.bf16.mxu0 %v4164_v39 }
 0x206   : > { %3986 = vmatmul.mubr.msk.f32.vlgmr.msra.gmra.mrb[20].mxu1 %vm719_vm3, %v5426_v25 }
 0x207   : > { %4175 = vmatpush3.bf16.msra.mxu1 %v4172_v0  ;;  %3992 = vmatprep.mubr.msk.f32.mxu1 %vm719_vm3, %v4494_v63  ;;  %v5427_v0 = vld [vmem:[#allocation3_spill] sm:$0xff] }
 0x208   : > { %4167 = vmatpush3.bf16.msra.mxu0 %v4164_v39  ;;  %4177 = vmatprep.subr.bf16.mxu1 %v4176_v37 }
 0x209   : > { %4189 = vmatprep.subr.bf16.mxu0 %v4188_v19 }
 0x20a   : > { %3993 = vmatmul.mubr.msk.f32.vlgmr.msra.gmra.mrb[22].mxu1 %vm719_vm3, %v4499_v22 }
 0x20b   : > { %3979 = vmatmul.mubr.msk.f32.vlgmr.msra.gmra.mrb[40].mxu0 %vm930_vm5, %v5028_v13  ;;  %4179 = vmatpush3.bf16.msra.mxu1 %v4176_v37 }
 0x20c   : > { %4191 = vmatpush3.bf16.msra.mxu0 %v4188_v19  ;;  %4181 = vmatprep.subr.bf16.mxu1 %v4180_v4  ;;  %v4521_v42 = vpop.permute.xlu1 %4520 }
 0x20d   : > { %4193 = vmatprep.subr.bf16.mxu0 %v4192_v57  ;;  %4014 = vmatprep.mubr.msk.f32.mxu0 %vm719_vm3, %v3644_v17  ;;  %v4484_v17 = vunpack.i.l.bf16 %v5168_v41  ;;  %v4523_v3 = vunpack.i.h.bf16 %v4521_v42  ;;  %v4522_v6 = vunpack.i.l.bf16 %v4521_v42 }
 0x20e   : > { %4007 = vmatprep.mubr.msk.f32.mxu1 %vm930_vm5, %v5006_v21 }
 0x20f   : > { %4015 = vmatmul.mubr.msk.f32.vlgmr.msra.gmra.mrb[42].mxu0 %vm719_vm3, %v3645_v44  ;;  %4183 = vmatpush3.bf16.msra.mxu1 %v4180_v4  ;;  %v4212_v44 = vpack.c.bf16 %v4485_v7, %v4484_v17  ;;  %v3055_v10 = vsel %vm682_vm4, %v4944_v54, %v4522_v6  ;;  %v3056_v41 = vsel %vm682_vm4, %v4946_v55, %v4523_v3 }
 0x210   : > { %4195 = vmatpush3.bf16.msra.mxu0 %v4192_v57  ;;  %4185 = vmatprep.subr.bf16.mxu1 %v4184_v1  ;;  %v4526_v49 = vpop.permute.xlu1 %4525  ;;  %v4216_v34 = vpack.c.bf16 %v3056_v41, %v3055_v10 }
 0x211   : > { %v4527_v36 = vunpack.i.l.bf16 %v4526_v49 }
 0x213   : > { %4187 = vmatpush3.bf16.msra.mxu1 %v4184_v1  ;;  %v2727_v39 = vsel %vm682_vm4, %v4527_v36, %v4914_v40 }
 0x214   : > { %4209 = vmatprep.subr.bf16.mxu1 %v4208_v35  ;;  %v4536_v12 = vpop.permute.xlu1 %4535 }
 0x215   : > { %v4538_v30 = vunpack.i.h.bf16 %v4536_v12  ;;  %v4537_v63 = vunpack.i.l.bf16 %v4536_v12 }
 0x216   : > { %4008 = vmatmul.mubr.msk.f32.vlgmr.msra.gmra.mrb[24].mxu1 %vm930_vm5, %v5028_v13 }
 0x217   : > { %4211 = vmatpush3.bf16.msra.mxu1 %v4208_v35  ;;  %4043 = vmatprep.mubr.msk.f32.mxu1 %vm719_vm3, %v3648_v33 }
 0x218   : > { %4213 = vmatprep.subr.bf16.mxu1 %v4212_v44  ;;  %v4541_v31 = vpop.permute.xlu1 %4540 }
 0x219   : > { %v4543_v27 = vunpack.i.h.bf16 %v4541_v31  ;;  %v4542_v53 = vunpack.i.l.bf16 %v4541_v31 }
 0x21a   : > { %4044 = vmatmul.mubr.msk.f32.vlgmr.msra.gmra.mrb[26].mxu1 %vm719_vm3, %v3649_v45 }
 0x21b   : > { %4215 = vmatpush3.bf16.msra.mxu1 %v4212_v44  ;;  %v3065_v55 = vsel %vm682_vm4, %v4542_v53, %v4934_v51  ;;  %v3066_v28 = vsel %vm682_vm4, %v4543_v27, %v4936_v52  ;;  %v4528_v51 = vunpack.i.h.bf16 %v4526_v49 }
 0x21c   : > { %4217 = vmatprep.subr.bf16.mxu1 %v4216_v34  ;;  %v4220_v43 = vpack.c.bf16 %v3066_v28, %v3065_v55  ;;  %v4551_v8 = vpop.permute.xlu1 %4550 }
 0x21d   : > { %v2728_v48 = vsel %vm682_vm4, %v4528_v51, %v5427_v0  ;;  %v4553_v61 = vunpack.i.h.bf16 %v4551_v8  ;;  %v4552_v29 = vunpack.i.l.bf16 %v4551_v8 }
 0x228   : > { %v4504_v56 = vpop.trf.xlu0 }
 0x229   : > { %v4508_v33 = vunpack.i.h.bf16 %v4504_v56  ;;  %v4505_v38 = vunpack.i.l.bf16 %v4504_v56 }
 0x22b   : > { %4021 = vmatprep.mubr.msk.f32.mxu0 %vm719_vm3, %v4505_v38  ;;  %4050 = vmatprep.mubr.msk.f32.mxu1 %vm719_vm3, %v4508_v33 }
 0x22c   : > { %v4509_v54 = vpop.trf.xlu0 }
 0x22d   : > { %v4513_v45 = vunpack.i.h.bf16 %v4509_v54  ;;  %v4510_v59 = vunpack.i.l.bf16 %v4509_v54 }
 0x22f   : > { %4022 = vmatmul.mubr.msk.f32.vlgmr.msra.gmra.mrb[44].mxu0 %vm719_vm3, %v4510_v59  ;;  %4051 = vmatmul.mubr.msk.f32.vlgmr.msra.gmra.mrb[28].mxu1 %vm719_vm3, %v4513_v45 }
 0x230   : > { %4219 = vmatpush3.bf16.msra.mxu1 %v4216_v34  ;;  %4036 = vmatprep.mubr.msk.f32.mxu0 %vm930_vm5, %v5006_v21 }
 0x231   : > { %4221 = vmatprep.subr.bf16.mxu1 %v4220_v43  ;;  %4065 = vmatprep.mubr.msk.f32.mxu1 %vm930_vm5, %v5006_v21 }
 0x234   : > { %4223 = vmatpush3.bf16.msra.mxu1 %v4220_v43 }
 0x247   : > { %v4516_v11 = vpop.permute.xlu0 %4515 }
 0x248   : > { %v4518_v52 = vunpack.i.h.bf16 %v4516_v11  ;;  %v4517_v18 = vunpack.i.l.bf16 %v4516_v11 }
 0x249   : > { %v3842_v60 = vpop.f32.mrb[32].mxu0 }
 0x24a   : > { %v2717_v14 = vsel %vm682_vm4, %v4924_v46, %v4517_v18  ;;  %v2718_v58 = vsel %vm682_vm4, %v4926_v47, %v4518_v52  ;;  %v5284_v21 = vpop.f32.mrb[33].mxu0  ;;  %v4200_v46 = vpack.c.bf16 %v2728_v48, %v2727_v39 }
 0x24b   : > { %v4531_v24 = vpop.permute.xlu0 %4530  ;;  %v4196_v2 = vpack.c.bf16 %v2718_v58, %v2717_v14 }
 0x24c   : > { %v4533_v32 = vunpack.i.h.bf16 %v4531_v24  ;;  %v4532_v19 = vunpack.i.l.bf16 %v4531_v24 }
 0x24d   : > { %4197 = vmatprep.subr.bf16.mxu0 %v4196_v2 }
 0x24e   : > { %4199 = vmatpush3.bf16.msra.mxu0 %v4196_v2  ;;  %v2741_v47 = vsel %vm682_vm4, %v4532_v19, %v4537_v63  ;;  %v2742_v26 = vsel %vm682_vm4, %v4533_v32, %v4538_v30 }
 0x24f   : > { %v4546_v40 = vpop.permute.xlu0 %4545  ;;  %4201 = vmatprep.subr.bf16.mxu0 %v4200_v46  ;;  %v4204_v20 = vpack.c.bf16 %v2742_v26, %v2741_v47 }
 0x250   : > { %v4548_v22 = vunpack.i.h.bf16 %v4546_v40  ;;  %v4547_v25 = vunpack.i.l.bf16 %v4546_v40 }
 0x251   : > { %v3849_v37 = vpop.f32.mrb[0].mxu1 }
 0x252   : > { %4203 = vmatpush3.bf16.msra.mxu0 %v4200_v46  ;;  %924 = vrot.lane.b32.xlu0 %v3849_v37, %s4595_s10  ;;  %v911_v62 = vpop.f32.mrb[1].mxu1  ;;  %v3079_v50 = vsel %vm682_vm4, %v4547_v25, %v4552_v29  ;;  %v3080_v5 = vsel %vm682_vm4, %v4548_v22, %v4553_v61 }
 0x253   : > { %4205 = vmatprep.subr.bf16.mxu0 %v4204_v20  ;;  %v4224_v57 = vpack.c.bf16 %v3080_v5, %v3079_v50 }
 0x255   : > { %4225 = vmatprep.subr.bf16.mxu1 %v4224_v57 }
 0x256   : > { %4207 = vmatpush3.bf16.msra.mxu0 %v4204_v20  ;;  %922 = vrot.lane.b32.xlu0 %v911_v62, %s4595_s10 }
 0x257   : > { %4227 = vmatpush3.bf16.msra.mxu1 %v4224_v57 }
 0x259   : > { %4037 = vmatmul.mubr.msk.f32.vlgmr.msra.gmra.mrb[46].mxu0 %vm930_vm5, %v5028_v13 }
 0x25a   : > { %4066 = vmatmul.mubr.msk.f32.vlgmr.msra.gmra.mrb[30].mxu1 %vm930_vm5, %v5028_v13 }
 0x25d   : > { %v3864_v4 = vpop.f32.mrb[2].mxu1 }
 0x25e   : > { %v1003_v9 = vpop.f32.mrb[3].mxu1 }
 0x261   : > { %v3871_v15 = vpop.f32.mrb[4].mxu1 }
 0x262   : > { %v1136_v16 = vpop.f32.mrb[5].mxu1 }
 0x269   : > { %v3878_v23 = vpop.f32.mrb[6].mxu1 }
 0x26a   : > { %1268 = vrot.lane.b32.xlu1 %v3878_v23, %s4595_s10  ;;  %v1255_v1 = vpop.f32.mrb[7].mxu1 }
 0x26b   : > { %1266 = vrot.lane.b32.xlu0 %v1255_v1, %s4595_s10 }
 0x275   : > { %v3893_v42 = vpop.f32.mrb[8].mxu1 }
 0x276   : > { %v1340_v35 = vpop.f32.mrb[9].mxu1 }
 0x293   : > { %v3936_v7 = vpop.f32.mrb[34].mxu0 }
 0x294   : > { %v1931_v17 = vpop.f32.mrb[35].mxu0  ;;  %1944 = vrot.lane.b32.xlu1 %v3936_v7, %s4595_s10 }
 0x295   : > { %1942 = vrot.lane.b32.xlu0 %v1931_v17, %s4595_s10 }
 0x297   : > { %v5300_v13 = vpop.f32.mrb[36].mxu0 }
 0x298   : > { %v5302_v3 = vpop.f32.mrb[37].mxu0 }
 0x2b4   : > { %v5304_v6 = vpop.f32.mrb[10].mxu1 }
 0x2b5   : > { %v5306_v44 = vpop.f32.mrb[11].mxu1 }
 0x2b8   : > { %v3907_v49 = vpop.f32.mrb[12].mxu1 }
 0x2b9   : > { %v1593_v10 = vpop.f32.mrb[13].mxu1 }
 0x2c4   : > { %v925_v41 = vpop.permute.xlu0 %924 }
 0x2c5   : > { %v929_v34 = vsel %vm682_vm4, %v3842_v60, %v925_v41  ;;  %v5316_v12 = vpop.f32.mrb[14].mxu1 }
 0x2c6   : > { %v1009_v31 = vadd.f32 %v3864_v4, %v929_v34  ;;  %v5318_v27 = vpop.f32.mrb[15].mxu1 }
 0x2c8   : > { %1013 = vst.msk [vmem:[%s5313_s23 + $0x8] sm:$0xff] %vm719_vm3, %v1009_v31  ;;  %v923_v53 = vpop.permute.xlu0 %922 }
 0x2c9   : > { %v928_v56 = vsel %vm682_vm4, %v5284_v21, %v923_v53  ;;  %v3929_v33 = vpop.f32.mrb[16].mxu1 }
 0x2ca   : > { %v1004_v38 = vadd.f32 %v1003_v9, %v928_v56  ;;  %v1812_v54 = vpop.f32.mrb[17].mxu1 }
 0x2cc   : > { %1012 = vst.msk [vmem:[%s5313_s23] sm:$0xff] %vm719_vm3, %v1004_v38 }
 0x2d2   : > { %v3965_v55 = vpop.f32.mrb[38].mxu0 }
 0x2d3   : > { %v2269_v28 = vpop.f32.mrb[39].mxu0  ;;  %2282 = vrot.lane.b32.xlu1 %v3965_v55, %s4595_s10 }
 0x2d4   : > { %2280 = vrot.lane.b32.xlu0 %v2269_v28, %s4595_s10 }
 0x2d5   : > { %v3951_v45 = vpop.f32.mrb[18].mxu1 }
 0x2d6   : > { %v2016_v59 = vpop.f32.mrb[19].mxu1 }
 0x2d7   : > { %1606 = vrot.lane.b32.xlu1 %v3907_v49, %s4595_s10 }
 0x2d8   : > { %1604 = vrot.lane.b32.xlu0 %v1593_v10, %s4595_s10 }
 0x2d9   : > { %v5330_v43 = vpop.f32.mrb[20].mxu1 }
 0x2da   : > { %v5332_v36 = vpop.f32.mrb[21].mxu1 }
 0x2dc   : > { %v1269_v51 = vpop.permute.xlu1 %1268 }
 0x2dd   : > { %v1273_v11 = vsel %vm682_vm4, %v3871_v15, %v1269_v51  ;;  %v1267_v52 = vpop.permute.xlu0 %1266  ;;  %v3994_v39 = vpop.f32.mrb[22].mxu1 }
 0x2de   : > { %v1346_v18 = vadd.f32 %v3893_v42, %v1273_v11  ;;  %v1272_v60 = vsel %vm682_vm4, %v1136_v16, %v1267_v52  ;;  %v3980_v14 = vpop.f32.mrb[40].mxu0  ;;  %v2607_v48 = vpop.f32.mrb[23].mxu1 }
 0x2df   : > { %v1341_v58 = vadd.f32 %v1340_v35, %v1272_v60  ;;  %v2354_v0 = vpop.f32.mrb[41].mxu0 }
 0x2e0   : > { %3552 = vst.msk [vmem:[%s5313_s23 + $0x18] sm:$0xff] %vm719_vm3, %v1346_v18 }
 0x2e1   : > { %3551 = vst.msk [vmem:[%s5313_s23 + $0x10] sm:$0xff] %vm719_vm3, %v1341_v58 }
 0x2e2   : > { %v4016_v21 = vpop.f32.mrb[42].mxu0 }
 0x2e3   : > { %v2826_v24 = vpop.f32.mrb[43].mxu0 }
 0x2e9   : > { %v4009_v2 = vpop.f32.mrb[24].mxu1 }
 0x2ea   : > { %v2692_v30 = vpop.f32.mrb[25].mxu1 }
 0x2ed   : > { %v4045_v63 = vpop.f32.mrb[26].mxu1 }
 0x2ee   : > { %v3164_v32 = vpop.f32.mrb[27].mxu1 }
 0x302   : > { %v4023_v19 = vpop.f32.mrb[44].mxu0  ;;  %v4052_v8 = vpop.f32.mrb[28].mxu1 }
 0x303   : > { %v2945_v46 = vpop.f32.mrb[45].mxu0  ;;  %2958 = vrot.lane.b32.xlu1 %v4023_v19, %s4595_s10  ;;  %v3283_v47 = vpop.f32.mrb[29].mxu1 }
 0x304   : > { %2956 = vrot.lane.b32.xlu0 %v2945_v46, %s4595_s10 }
 0x306   : > { %v1945_v26 = vpop.permute.xlu1 %1944 }
 0x307   : > { %v1949_v40 = vsel %vm682_vm4, %v3929_v33, %v1945_v26  ;;  %v1943_v61 = vpop.permute.xlu0 %1942  ;;  %2620 = vrot.lane.b32.xlu1 %v3994_v39, %s4595_s10 }
 0x308   : > { %v2022_v29 = vadd.f32 %v3951_v45, %v1949_v40  ;;  %v1948_v22 = vsel %vm682_vm4, %v1812_v54, %v1943_v61  ;;  %2618 = vrot.lane.b32.xlu0 %v2607_v48, %s4595_s10 }
 0x309   : > { %v2017_v25 = vadd.f32 %v2016_v59, %v1948_v22 }
 0x30a   : > { %3572 = vst.msk [vmem:[%s5313_s23 + $0x38] sm:$0xff] %vm719_vm3, %v2022_v29 }
 0x30b   : > { %3571 = vst.msk [vmem:[%s5313_s23 + $0x30] sm:$0xff] %vm719_vm3, %v2017_v25  ;;  %3296 = vrot.lane.b32.xlu1 %v4052_v8, %s4595_s10 }
 0x30c   : > { %3294 = vrot.lane.b32.xlu0 %v3283_v47, %s4595_s10 }
 0x32c   : > { %v4038_v37 = vpop.f32.mrb[46].mxu0 }
 0x32d   : > { %v3030_v20 = vpop.f32.mrb[47].mxu0  ;;  %v4067_v62 = vpop.f32.mrb[30].mxu1 }
 0x32e   : > { %v3368_v50 = vpop.f32.mrb[31].mxu1 }
 0x345   : > { %v2283_v5 = vpop.permute.xlu1 %2282 }
 0x346   : > { %v2287_v57 = vsel %vm682_vm4, %v5300_v13, %v2283_v5  ;;  %v2281_v4 = vpop.permute.xlu0 %2280 }
 0x347   : > { %v2360_v9 = vadd.f32 %v3980_v14, %v2287_v57  ;;  %v2286_v15 = vsel %vm682_vm4, %v5302_v3, %v2281_v4 }
 0x348   : > { %v2355_v16 = vadd.f32 %v2354_v0, %v2286_v15 }
 0x349   : > { %3582 = vst.msk [vmem:[%s5313_s23 + $0x48] sm:$0xff] %vm719_vm3, %v2360_v9  ;;  %v1607_v23 = vpop.permute.xlu1 %1606 }
 0x34a   : > { %3581 = vst.msk [vmem:[%s5313_s23 + $0x40] sm:$0xff] %vm719_vm3, %v2355_v16  ;;  %v1611_v1 = vsel %vm682_vm4, %v5304_v6, %v1607_v23  ;;  %v1605_v42 = vpop.permute.xlu0 %1604 }
 0x34b   : > { %v1684_v35 = vadd.f32 %v5316_v12, %v1611_v1  ;;  %v1610_v7 = vsel %vm682_vm4, %v5306_v44, %v1605_v42 }
 0x34c   : > { %v1679_v17 = vadd.f32 %v5318_v27, %v1610_v7 }
 0x34d   : > { %3562 = vst.msk [vmem:[%s5313_s23 + $0x28] sm:$0xff] %vm719_vm3, %v1684_v35 }
 0x34e   : > { %3561 = vst.msk [vmem:[%s5313_s23 + $0x20] sm:$0xff] %vm719_vm3, %v1679_v17 }
 0x375   : > { %v2959_v13 = vpop.permute.xlu1 %2958 }
 0x376   : > { %v2963_v3 = vsel %vm682_vm4, %v4016_v21, %v2959_v13  ;;  %v2957_v49 = vpop.permute.xlu0 %2956 }
 0x377   : > { %v3036_v10 = vadd.f32 %v4038_v37, %v2963_v3  ;;  %v2962_v6 = vsel %vm682_vm4, %v2826_v24, %v2957_v49 }
 0x378   : > { %v3031_v41 = vadd.f32 %v3030_v20, %v2962_v6 }
 0x379   : > { %3602 = vst.msk [vmem:[%s5313_s23 + $0x68] sm:$0xff] %vm719_vm3, %v3036_v10  ;;  %v2621_v44 = vpop.permute.xlu1 %2620 }
 0x37a   : > { %3601 = vst.msk [vmem:[%s5313_s23 + $0x60] sm:$0xff] %vm719_vm3, %v3031_v41  ;;  %v2625_v34 = vsel %vm682_vm4, %v5330_v43, %v2621_v44  ;;  %v2619_v12 = vpop.permute.xlu0 %2618 }
 0x37b   : > { %v2698_v31 = vadd.f32 %v4009_v2, %v2625_v34  ;;  %v2624_v27 = vsel %vm682_vm4, %v5332_v36, %v2619_v12 }
 0x37c   : > { %v2693_v53 = vadd.f32 %v2692_v30, %v2624_v27 }
 0x37d   : > { %3592 = vst.msk [vmem:[%s5313_s23 + $0x58] sm:$0xff] %vm719_vm3, %v2698_v31  ;;  %v3297_v56 = vpop.permute.xlu1 %3296 }
 0x37e   : > { %3591 = vst.msk [vmem:[%s5313_s23 + $0x50] sm:$0xff] %vm719_vm3, %v2693_v53  ;;  %v3301_v33 = vsel %vm682_vm4, %v4045_v63, %v3297_v56  ;;  %v3295_v38 = vpop.permute.xlu0 %3294 }
 0x37f   : > { %v3374_v54 = vadd.f32 %v4067_v62, %v3301_v33  ;;  %v3300_v55 = vsel %vm682_vm4, %v3164_v32, %v3295_v38 }
 0x380   : > { %v3369_v28 = vadd.f32 %v3368_v50, %v3300_v55 }
 0x381   : > { %3612 = vst.msk [vmem:[%s5313_s23 + $0x78] sm:$0xff] %vm719_vm3, %v3374_v54 }
 0x382   : > { %3611 = vst.msk [vmem:[%s5313_s23 + $0x70] sm:$0xff] %vm719_vm3, %v3369_v28 }
 0x383 PF: > { %s15_s20 = sadd.s32 1, %s4592_s20   ;;  %s5428_s18 = smov %s4588_s19 }
 0x384   : > { %p12_p5 = scmp.ge.s32.totalorder %s15_s20, 4   ;;  %s5429_s19 = smov %s5431_s21 }
 0x386   :  { %14 = sbr.rel (!%p12_p5) target bundleno = 2 (0x2), region = 94 }

</bundles_post_ra>
